<compile_context>
chip_gen: v7x
topology: tpu7x:2x2x1
jax: 0.10.0
libtpu: 0.0.40
codegen_flags: <defaults>
</compile_context>

<pallas_src>
import functools

import jax
import jax.numpy as jnp
import numpy as np
from jax import lax
from jax.experimental import pallas as pl
from jax.experimental.pallas import tpu as pltpu

LANE = 128
SUBLANE = 8


def _round_up(x, m):
    return (x + m - 1) // m * m


# ----------------------------------------------------------------------------
# Vocab projection: (M, K) @ (K, N) -> (M, N) f32, single K tile (K = Hp_last),
# no bias, no accumulator revisit.  grid = (M/tm, N/tn), both parallel.
# ----------------------------------------------------------------------------
def _matmul_kernel(a_ref, b_ref, o_ref):
    o_ref[...] = jnp.dot(a_ref[...], b_ref[...],
                         preferred_element_type=jnp.float32).astype(o_ref.dtype)


def matmul_pallas(a, b, *, tm=256, tn=256):
    """a: (M, K) bf16, K a lane multiple.  b: (K, N) bf16, N a lane multiple
    (zero-padded).  Returns f32 (M, N)."""
    M, K = a.shape
    Kb, N = b.shape
    assert K == Kb and K % LANE == 0 and N % LANE == 0
    # bf16 packs two rows per sublane -> round the M tile to a multiple of 16.
    tm_eff = min(tm, _round_up(M, 16))
    Mp = _round_up(M, tm_eff)
    a_p = a if Mp == M else jnp.pad(a, ((0, Mp - M), (0, 0)))
    tn_eff = tn if N % tn == 0 else LANE
    grid = (Mp // tm_eff, N // tn_eff)
    out = pl.pallas_call(
        _matmul_kernel,
        out_shape=jax.ShapeDtypeStruct((Mp, N), jnp.float32),
        grid_spec=pltpu.PrefetchScalarGridSpec(
            num_scalar_prefetch=0,
            grid=grid,
            in_specs=[
                pl.BlockSpec((tm_eff, K), lambda i, j: (i, 0)),
                pl.BlockSpec((K, tn_eff), lambda i, j: (0, j)),
            ],
            out_specs=pl.BlockSpec((tm_eff, tn_eff), lambda i, j: (i, j)),
        ),
        compiler_params=pltpu.CompilerParams(
            dimension_semantics=("parallel", "parallel")),
    )(a_p, b)
    return out[:M] if Mp != M else out


# ----------------------------------------------------------------------------
# Fused GRU layer kernel: for each time chunk, compute the input projection
# gi = x_chunk @ W_ih + b_ih with one MXU matmul into VMEM scratch, then run
# the serial recurrence over the TT steps (unrolled), carrying h in a VMEM
# scratch across chunks.  grid = (T_pad // TT,), sequential ('arbitrary').
# Gate blocks are Hp-wide (Hp % 128 == 0) so all slices are lane-aligned;
# padded lanes stay exactly zero by construction (zero weight/bias pads).
# ----------------------------------------------------------------------------
def _gru_chunk_kernel(x_ref, h0_ref, w_ih_ref, b_ih_ref, w_hh_ref, b_hh_ref,
                      y_ref, hT_ref, gi_scratch, h_scratch,
                      *, Hp, TT, Bp, T_real):
    c = pl.program_id(0)
    nc = pl.num_programs(0)

    @pl.when(c == 0)
    def _():
        h_scratch[...] = h0_ref[...]

    # Whole-chunk input projection: (TT*Bp, Kp) @ (Kp, 3Hp) + b_ih, f32 acc.
    gi_scratch[...] = (
        jnp.dot(x_ref[...], w_ih_ref[...], preferred_element_type=jnp.float32)
        + b_ih_ref[...])

    w_hh = w_hh_ref[...]          # (Hp, 3Hp) bf16
    b_hh = b_hh_ref[...]          # (1, 3Hp) f32
    masked_tail = (T_real % TT) != 0       # static
    limit = T_real - c * TT                # hoisted out of the unrolled body

    def step(t, h_prev):
        row = pl.multiple_of(t * Bp, Bp)
        gi = gi_scratch[pl.ds(row, Bp), :]             # (Bp, 3Hp) f32
        gh = jnp.dot(h_prev.astype(w_hh.dtype), w_hh,
                     preferred_element_type=jnp.float32) + b_hh
        # PyTorch gate order: r, z, n — lane-aligned Hp slices.
        r = jax.nn.sigmoid(gi[:, 0 * Hp:1 * Hp] + gh[:, 0 * Hp:1 * Hp])
        z = jax.nn.sigmoid(gi[:, 1 * Hp:2 * Hp] + gh[:, 1 * Hp:2 * Hp])
        n = jnp.tanh(gi[:, 2 * Hp:3 * Hp] + r * gh[:, 2 * Hp:3 * Hp])
        h_new = (1.0 - z) * n + z * h_prev
        if masked_tail:
            # keep h unchanged on padded time steps so hT stays correct
            h_new = jnp.where(t < limit, h_new, h_prev)
        y_ref[pl.ds(row, Bp), :] = h_new.astype(y_ref.dtype)
        return h_new

    h_last = lax.fori_loop(0, TT, step, h_scratch[...], unroll=True)
    h_scratch[...] = h_last

    @pl.when(c == nc - 1)
    def _():
        hT_ref[...] = h_last


def gru_layer_pallas(x_flat, h0_p, w_ih_p, b_ih_p, w_hh_p, b_hh_p,
                     *, T_real, TT, Bp):
    """x_flat: (T_pad*Bp, Kp) bf16 (padded, flat).  h0_p: (Bp, Hp) f32.
    w_ih_p: (Kp, 3Hp) bf16; b_ih_p: (1, 3Hp) f32; w_hh_p: (Hp, 3Hp) bf16;
    b_hh_p: (1, 3Hp) f32.  Returns y (T_pad*Bp, Hp) bf16, hT (Bp, Hp) f32."""
    M, Kp = x_flat.shape
    G3 = w_ih_p.shape[1]
    Hp = G3 // 3
    Tp = M // Bp
    nchunks = Tp // TT
    kernel = functools.partial(_gru_chunk_kernel, Hp=Hp, TT=TT, Bp=Bp,
                               T_real=T_real)
    return pl.pallas_call(
        kernel,
        out_shape=(jax.ShapeDtypeStruct((M, Hp), x_flat.dtype),
                   jax.ShapeDtypeStruct((Bp, Hp), jnp.float32)),
        grid_spec=pltpu.PrefetchScalarGridSpec(
            num_scalar_prefetch=0,
            grid=(nchunks,),
            in_specs=[
                pl.BlockSpec((TT * Bp, Kp), lambda c: (c, 0)),
                pl.BlockSpec((Bp, Hp), lambda c: (0, 0)),
                pl.BlockSpec((Kp, G3), lambda c: (0, 0)),
                pl.BlockSpec((1, G3), lambda c: (0, 0)),
                pl.BlockSpec((Hp, G3), lambda c: (0, 0)),
                pl.BlockSpec((1, G3), lambda c: (0, 0)),
            ],
            out_specs=[
                pl.BlockSpec((TT * Bp, Hp), lambda c: (c, 0)),
                pl.BlockSpec((Bp, Hp), lambda c: (0, 0)),
            ],
            scratch_shapes=[
                pltpu.VMEM((TT * Bp, G3), jnp.float32),   # gi for the chunk
                pltpu.VMEM((Bp, Hp), jnp.float32),        # h carry
            ],
        ),
        compiler_params=pltpu.CompilerParams(
            dimension_semantics=("arbitrary",)),
    )(x_flat, h0_p, w_ih_p, b_ih_p, w_hh_p, b_hh_p)


# ----------------------------------------------------------------------------
# Parameter init (PyTorch-shaped) and one-time preparation (transpose, pad,
# bf16 cast) so the forward pass does no per-call weight reshuffling.
# ----------------------------------------------------------------------------
def init_params(key, vocab_size, embedding_dim, hidden_dims):
    ks = jax.random.split(key, 2 + 4 * len(hidden_dims))
    emb = 0.1 * jax.random.normal(ks[0], (vocab_size, embedding_dim), jnp.float32)
    emb = emb.at[0].set(0.0)                           # padding_idx=0
    dims = [embedding_dim] + list(hidden_dims)
    gru = []
    for i, H in enumerate(hidden_dims):
        Din = dims[i]
        k = 1.0 / np.sqrt(H)
        kw = ks[2 + 4 * i: 2 + 4 * (i + 1)]
        w_ih = jax.random.uniform(kw[0], (3 * H, Din), jnp.float32, -k, k)
        w_hh = jax.random.uniform(kw[1], (3 * H, H), jnp.float32, -k, k)
        b_ih = jax.random.uniform(kw[2], (3 * H,), jnp.float32, -k, k)
        b_hh = jax.random.uniform(kw[3], (3 * H,), jnp.float32, -k, k)
        gru.append((w_ih, w_hh, b_ih, b_hh))
    kv = 1.0 / np.sqrt(hidden_dims[-1])
    w_out = jax.random.uniform(ks[1], (vocab_size, hidden_dims[-1]), jnp.float32, -kv, kv)
    return {"embedding": emb, "gru": gru, "w_out": w_out}


def prepare_params(raw, embedding_dim, hidden_dims, vocab_size,
                   compute_dtype=jnp.bfloat16):
    dims = [embedding_dim] + list(hidden_dims)
    # Embedding table pre-padded to a lane multiple and pre-cast to bf16, so
    # the gather already produces lane-aligned bf16 activations.
    Ep = _round_up(embedding_dim, LANE)
    emb_p = np.zeros((vocab_size, Ep), np.float32)
    emb_p[:, :embedding_dim] = np.asarray(raw["embedding"])
    layers = []
    for i, H in enumerate(hidden_dims):
        Din = dims[i]
        Kp = _round_up(Din, LANE)     # padded input width seen by the kernel
        Hp = _round_up(H, LANE)
        w_ih, w_hh, b_ih, b_hh = (np.asarray(p) for p in raw["gru"][i])
        w_ih_p = np.zeros((Kp, 3 * Hp), np.float32)
        w_hh_p = np.zeros((Hp, 3 * Hp), np.float32)
        b_ih_p = np.zeros((3 * Hp,), np.float32)
        b_hh_p = np.zeros((3 * Hp,), np.float32)
        for g in range(3):
            w_ih_p[:Din, g * Hp:g * Hp + H] = w_ih[g * H:(g + 1) * H, :].T
            w_hh_p[:H, g * Hp:g * Hp + H] = w_hh[g * H:(g + 1) * H, :].T
            b_ih_p[g * Hp:g * Hp + H] = b_ih[g * H:(g + 1) * H]
            b_hh_p[g * Hp:g * Hp + H] = b_hh[g * H:(g + 1) * H]
        layers.append(dict(
            H=H, Hp=Hp,
            w_ih=jnp.asarray(w_ih_p, compute_dtype),
            b_ih=jnp.asarray(b_ih_p.reshape(1, -1), jnp.float32),
            w_hh=jnp.asarray(w_hh_p, compute_dtype),
            b_hh=jnp.asarray(b_hh_p.reshape(1, -1), jnp.float32),
        ))
    H_last = hidden_dims[-1]
    Hp_last = _round_up(H_last, LANE)
    Vp = _round_up(vocab_size, LANE)
    w_out_p = np.zeros((Hp_last, Vp), np.float32)
    w_out_p[:H_last, :vocab_size] = np.asarray(raw["w_out"]).T
    return dict(
        embedding=jnp.asarray(emb_p, compute_dtype),
        layers=layers,
        w_out=jnp.asarray(w_out_p, compute_dtype),
        vocab_size=vocab_size,
        compute_dtype=compute_dtype,
    )


# ----------------------------------------------------------------------------
# Decoder forward (matches PyTorch Decoder.forward with dropout=0)
# ----------------------------------------------------------------------------
def decoder_forward(prepared, x_tokens, state, *, TT=32):
    # TODO(synk): Dropout is identity at p=0 (module default used here); the
    # embedding lookup is a plain-JAX gather (no Pallas kernel needed).
    T, B = x_tokens.shape
    Bp = _round_up(B, SUBLANE)
    TT_eff = max(1, min(TT, T))
    T_pad = _round_up(T, TT_eff)

    emb = prepared["embedding"][x_tokens]                    # (T, B, Ep) bf16
    x = jnp.pad(emb, ((0, T_pad - T), (0, Bp - B), (0, 0)))  # (T_pad, Bp, Ep)
    x = x.reshape(T_pad * Bp, x.shape[-1])                   # flat, stays padded

    states = []
    cur = 0
    for layer in prepared["layers"]:
        H, Hp = layer["H"], layer["Hp"]
        h0 = state[:, cur:cur + H]
        cur += H
        h0_p = jnp.zeros((Bp, Hp), jnp.float32).at[:B, :H].set(h0)
        y, hT = gru_layer_pallas(x, h0_p, layer["w_ih"], layer["b_ih"],
                                 layer["w_hh"], layer["b_hh"],
                                 T_real=T, TT=TT_eff, Bp=Bp)
        states.append(hT[:B, :H])
        x = y                                                # (T_pad*Bp, Hp) bf16
    # Vocab projection (bias=False): single-K-tile tiled matmul, f32 out.
    out = matmul_pallas(x, prepared["w_out"])
    out = out.reshape(T_pad, Bp, -1)[:T, :B, :prepared["vocab_size"]]
    return out, states


# ----------------------------------------------------------------------------
# Pure-JAX f32 reference (for correctness check)
# ----------------------------------------------------------------------------
def _gru_ref(x_seq, h0, w_ih, w_hh, b_ih, b_hh):
    H = h0.shape[-1]

    def step(h, x_t):
        gi = x_t @ w_ih.T + b_ih
        gh = h @ w_hh.T + b_hh
        r = jax.nn.sigmoid(gi[:, :H] + gh[:, :H])
        z = jax.nn.sigmoid(gi[:, H:2 * H] + gh[:, H:2 * H])
        n = jnp.tanh(gi[:, 2 * H:] + r * gh[:, 2 * H:])
        h_new = (1.0 - z) * n + z * h
        return h_new, h_new

    hT, ys = lax.scan(step, h0, x_seq)
    return ys, hT


def decoder_forward_ref(raw, hidden_dims, x_tokens, state):
    h = raw["embedding"][x_tokens]
    states = []
    cur = 0
    for i, H in enumerate(hidden_dims):
        h0 = state[:, cur:cur + H]
        cur += H
        h, hT = _gru_ref(h, h0, *raw["gru"][i])
        states.append(hT)
    return h @ raw["w_out"].T, states


if __name__ == "__main__":
    vocab_size = 32
    embedding_dim = 16
    hidden_dims = [32, 16]
    T, B = 8, 2

    key = jax.random.PRNGKey(0)
    k_tok, k_state, k_par = jax.random.split(key, 3)

    x_tokens = jax.random.randint(k_tok, (T, B), 0, vocab_size, dtype=jnp.int32)
    state = 0.1 * jax.random.normal(k_state, (B, sum(hidden_dims)), jnp.float32)
    raw = init_params(k_par, vocab_size, embedding_dim, hidden_dims)
    prepared = prepare_params(raw, embedding_dim, hidden_dims, vocab_size)

    out, states = decoder_forward(prepared, x_tokens, state)
    out = jax.block_until_ready(out)
    states = [jax.block_until_ready(s) for s in states]

    out_ref, states_ref = decoder_forward_ref(raw, hidden_dims, x_tokens, state)

    # bf16 matmul inputs / bf16 stored activations (f32 accumulation and gate
    # math) vs. a pure-f32 reference -> slightly looser tolerance.
    np.testing.assert_allclose(np.asarray(out), np.asarray(out_ref),
                               rtol=2e-2, atol=2e-2)
    for s, sr in zip(states, states_ref):
        np.testing.assert_allclose(np.asarray(s), np.asarray(sr),
                                   rtol=2e-2, atol=2e-2)

    assert out.shape == (T, B, vocab_size)
    assert [tuple(s.shape) for s in states] == [(B, h) for h in hidden_dims]

    print("KERNEL_OK")
</pallas_src>

<mosaic_0001>
module attributes {stable_mosaic.version = 11 : i64} {
  func.func @_gru_chunk_kernel(%arg0: i32, %arg1: memref<64x128xbf16, #tpu.memory_space<vmem>>, %arg2: memref<8x128xf32, #tpu.memory_space<vmem>>, %arg3: memref<128x384xbf16, #tpu.memory_space<vmem>>, %arg4: memref<1x384xf32, #tpu.memory_space<vmem>>, %arg5: memref<128x384xbf16, #tpu.memory_space<vmem>>, %arg6: memref<1x384xf32, #tpu.memory_space<vmem>>, %arg7: memref<64x128xbf16, #tpu.memory_space<vmem>>, %arg8: memref<8x128xf32, #tpu.memory_space<vmem>>, %arg9: memref<64x384xf32, #tpu.memory_space<vmem>>, %arg10: memref<8x128xf32, #tpu.memory_space<vmem>>) attributes {dimension_semantics = [#tpu.dimension_semantics<arbitrary>], iteration_bounds = array<i64: 1>, scalar_prefetch = 0 : i64, scratch_operands = 2 : i64, tpu.core_type = #tpu.core_type<tc>, window_params = [{transform_indices = @transform_0, window_bounds = array<i64: 64, 128>}, {pipeline_mode = #tpu.pipeline_mode<synchronous>, transform_indices = @transform_1, window_bounds = array<i64: 8, 128>}, {pipeline_mode = #tpu.pipeline_mode<synchronous>, transform_indices = @transform_2, window_bounds = array<i64: 128, 384>}, {pipeline_mode = #tpu.pipeline_mode<synchronous>, transform_indices = @transform_3, window_bounds = array<i64: 1, 384>}, {pipeline_mode = #tpu.pipeline_mode<synchronous>, transform_indices = @transform_4, window_bounds = array<i64: 128, 384>}, {pipeline_mode = #tpu.pipeline_mode<synchronous>, transform_indices = @transform_5, window_bounds = array<i64: 1, 384>}, {transform_indices = @transform_6, window_bounds = array<i64: 64, 128>}, {pipeline_mode = #tpu.pipeline_mode<synchronous>, transform_indices = @transform_7, window_bounds = array<i64: 8, 128>}]} {
    %c0_i32 = arith.constant 0 : i32
    %0 = arith.cmpi eq, %arg0, %c0_i32 : i32
    %1 = arith.extui %0 : i1 to i32
    %c0_i32_0 = arith.constant 0 : i32
    %2 = arith.cmpi ne, %1, %c0_i32_0 : i32
    scf.if %2 {
      %c0_75 = arith.constant 0 : index
      %c0_76 = arith.constant 0 : index
      %313 = vector.load %arg2[%c0_75, %c0_76] : memref<8x128xf32, #tpu.memory_space<vmem>>, vector<8x128xf32>
      %c0_77 = arith.constant 0 : index
      %c0_78 = arith.constant 0 : index
      %314 = vector.load %arg10[%c0_77, %c0_78] : memref<8x128xf32, #tpu.memory_space<vmem>>, vector<8x128xf32>
      tpu.vector_store %arg10[%c0_77, %c0_78], %313 {strides = array<i32>} : memref<8x128xf32, #tpu.memory_space<vmem>>, vector<8x128xf32>,
    } else {
    }
    %c0 = arith.constant 0 : index
    %c0_1 = arith.constant 0 : index
    %3 = vector.load %arg1[%c0, %c0_1] : memref<64x128xbf16, #tpu.memory_space<vmem>>, vector<64x128xbf16>
    %c0_2 = arith.constant 0 : index
    %c0_3 = arith.constant 0 : index
    %4 = vector.load %arg3[%c0_2, %c0_3] : memref<128x384xbf16, #tpu.memory_space<vmem>>, vector<128x384xbf16>
    %cst = arith.constant dense<0.000000e+00> : vector<64x384xf32>
    %5 = tpu.matmul %3, %4, %cst {dimension_numbers = #tpu.dot_dimension_numbers<[1], [0], [0], [1], [0, 0, 1, 1], [], []>} : vector<64x128xbf16>, vector<128x384xbf16>, vector<64x384xf32> -> vector<64x384xf32>
    %c0_4 = arith.constant 0 : index
    %c0_5 = arith.constant 0 : index
    %6 = vector.load %arg4[%c0_4, %c0_5] : memref<1x384xf32, #tpu.memory_space<vmem>>, vector<1x384xf32>
    %7 = vector.broadcast %6 : vector<1x384xf32> to vector<64x384xf32>
    %8 = arith.addf %5, %7 : vector<64x384xf32>
    %c0_6 = arith.constant 0 : index
    %c0_7 = arith.constant 0 : index
    %9 = vector.load %arg9[%c0_6, %c0_7] : memref<64x384xf32, #tpu.memory_space<vmem>>, vector<64x384xf32>
    tpu.vector_store %arg9[%c0_6, %c0_7], %8 {strides = array<i32>} : memref<64x384xf32, #tpu.memory_space<vmem>>, vector<64x384xf32>,
    %c0_8 = arith.constant 0 : index
    %c0_9 = arith.constant 0 : index
    %10 = vector.load %arg5[%c0_8, %c0_9] : memref<128x384xbf16, #tpu.memory_space<vmem>>, vector<128x384xbf16>
    %c0_10 = arith.constant 0 : index
    %c0_11 = arith.constant 0 : index
    %11 = vector.load %arg6[%c0_10, %c0_11] : memref<1x384xf32, #tpu.memory_space<vmem>>, vector<1x384xf32>
    %c0_12 = arith.constant 0 : index
    %c0_13 = arith.constant 0 : index
    %12 = vector.load %arg10[%c0_12, %c0_13] : memref<8x128xf32, #tpu.memory_space<vmem>>, vector<8x128xf32>
    %c0_i32_14 = arith.constant 0 : i32
    %c8_i32 = arith.constant 8 : i32
    %13 = arith.muli %c0_i32_14, %c8_i32 : i32
    %14 = tpu.assume_multiple %13, 8 : i32
    %15 = arith.index_cast %14 : i32 to index
    %c0_15 = arith.constant 0 : index
    %16 = vector.load %arg9[%15, %c0_15] : memref<64x384xf32, #tpu.memory_space<vmem>>, vector<8x384xf32>
    %17 = arith.truncf %12 : vector<8x128xf32> to vector<8x128xbf16>
    %cst_16 = arith.constant dense<0.000000e+00> : vector<8x384xf32>
    %18 = tpu.matmul %17, %10, %cst_16 {dimension_numbers = #tpu.dot_dimension_numbers<[1], [0], [0], [1], [0, 0, 1, 1], [], []>} : vector<8x128xbf16>, vector<128x384xbf16>, vector<8x384xf32> -> vector<8x384xf32>
    %19 = vector.broadcast %11 : vector<1x384xf32> to vector<8x384xf32>
    %20 = arith.addf %18, %19 : vector<8x384xf32>
    %21 = vector.extract_strided_slice %16 {offsets = [0, 0], sizes = [8, 128], strides = [1, 1]} : vector<8x384xf32> to vector<8x128xf32>
    %22 = vector.extract_strided_slice %20 {offsets = [0, 0], sizes = [8, 128], strides = [1, 1]} : vector<8x384xf32> to vector<8x128xf32>
    %23 = arith.addf %21, %22 : vector<8x128xf32>
    %24 = arith.negf %23 : vector<8x128xf32>
    %25 = math.exp %24 : vector<8x128xf32>
    %cst_17 = arith.constant 1.000000e+00 : f32
    %26 = vector.broadcast %cst_17 : f32 to vector<8x128xf32>
    %27 = arith.addf %26, %25 : vector<8x128xf32>
    %28 = arith.divf %26, %27 : vector<8x128xf32>
    %29 = vector.extract_strided_slice %16 {offsets = [0, 128], sizes = [8, 128], strides = [1, 1]} : vector<8x384xf32> to vector<8x128xf32>
    %30 = vector.extract_strided_slice %20 {offsets = [0, 128], sizes = [8, 128], strides = [1, 1]} : vector<8x384xf32> to vector<8x128xf32>
    %31 = arith.addf %29, %30 : vector<8x128xf32>
    %32 = arith.negf %31 : vector<8x128xf32>
    %33 = math.exp %32 : vector<8x128xf32>
    %cst_18 = arith.constant 1.000000e+00 : f32
    %34 = vector.broadcast %cst_18 : f32 to vector<8x128xf32>
    %35 = arith.addf %34, %33 : vector<8x128xf32>
    %36 = arith.divf %34, %35 : vector<8x128xf32>
    %37 = vector.extract_strided_slice %16 {offsets = [0, 256], sizes = [8, 128], strides = [1, 1]} : vector<8x384xf32> to vector<8x128xf32>
    %38 = vector.extract_strided_slice %20 {offsets = [0, 256], sizes = [8, 128], strides = [1, 1]} : vector<8x384xf32> to vector<8x128xf32>
    %39 = arith.mulf %28, %38 : vector<8x128xf32>
    %40 = arith.addf %37, %39 : vector<8x128xf32>
    %41 = math.tanh %40 : vector<8x128xf32>
    %cst_19 = arith.constant 1.000000e+00 : f32
    %42 = vector.broadcast %cst_19 : f32 to vector<8x128xf32>
    %43 = arith.subf %42, %36 : vector<8x128xf32>
    %44 = arith.mulf %43, %41 : vector<8x128xf32>
    %45 = arith.mulf %36, %12 : vector<8x128xf32>
    %46 = arith.addf %44, %45 : vector<8x128xf32>
    %47 = arith.truncf %46 : vector<8x128xf32> to vector<8x128xbf16>
    %48 = arith.index_cast %14 : i32 to index
    %c0_20 = arith.constant 0 : index
    %49 = vector.load %arg7[%48, %c0_20] : memref<64x128xbf16, #tpu.memory_space<vmem>>, vector<8x128xbf16>
    tpu.vector_store %arg7[%48, %c0_20], %47 {strides = array<i32>} : memref<64x128xbf16, #tpu.memory_space<vmem>>, vector<8x128xbf16>,
    %c1_i32 = arith.constant 1 : i32
    %c8_i32_21 = arith.constant 8 : i32
    %50 = arith.muli %c1_i32, %c8_i32_21 : i32
    %51 = tpu.assume_multiple %50, 8 : i32
    %52 = arith.index_cast %51 : i32 to index
    %c0_22 = arith.constant 0 : index
    %53 = vector.load %arg9[%52, %c0_22] : memref<64x384xf32, #tpu.memory_space<vmem>>, vector<8x384xf32>
    %54 = arith.truncf %46 : vector<8x128xf32> to vector<8x128xbf16>
    %cst_23 = arith.constant dense<0.000000e+00> : vector<8x384xf32>
    %55 = tpu.matmul %54, %10, %cst_23 {dimension_numbers = #tpu.dot_dimension_numbers<[1], [0], [0], [1], [0, 0, 1, 1], [], []>} : vector<8x128xbf16>, vector<128x384xbf16>, vector<8x384xf32> -> vector<8x384xf32>
    %56 = vector.broadcast %11 : vector<1x384xf32> to vector<8x384xf32>
    %57 = arith.addf %55, %56 : vector<8x384xf32>
    %58 = vector.extract_strided_slice %53 {offsets = [0, 0], sizes = [8, 128], strides = [1, 1]} : vector<8x384xf32> to vector<8x128xf32>
    %59 = vector.extract_strided_slice %57 {offsets = [0, 0], sizes = [8, 128], strides = [1, 1]} : vector<8x384xf32> to vector<8x128xf32>
    %60 = arith.addf %58, %59 : vector<8x128xf32>
    %61 = arith.negf %60 : vector<8x128xf32>
    %62 = math.exp %61 : vector<8x128xf32>
    %cst_24 = arith.constant 1.000000e+00 : f32
    %63 = vector.broadcast %cst_24 : f32 to vector<8x128xf32>
    %64 = arith.addf %63, %62 : vector<8x128xf32>
    %65 = arith.divf %63, %64 : vector<8x128xf32>
    %66 = vector.extract_strided_slice %53 {offsets = [0, 128], sizes = [8, 128], strides = [1, 1]} : vector<8x384xf32> to vector<8x128xf32>
    %67 = vector.extract_strided_slice %57 {offsets = [0, 128], sizes = [8, 128], strides = [1, 1]} : vector<8x384xf32> to vector<8x128xf32>
    %68 = arith.addf %66, %67 : vector<8x128xf32>
    %69 = arith.negf %68 : vector<8x128xf32>
    %70 = math.exp %69 : vector<8x128xf32>
    %cst_25 = arith.constant 1.000000e+00 : f32
    %71 = vector.broadcast %cst_25 : f32 to vector<8x128xf32>
    %72 = arith.addf %71, %70 : vector<8x128xf32>
    %73 = arith.divf %71, %72 : vector<8x128xf32>
    %74 = vector.extract_strided_slice %53 {offsets = [0, 256], sizes = [8, 128], strides = [1, 1]} : vector<8x384xf32> to vector<8x128xf32>
    %75 = vector.extract_strided_slice %57 {offsets = [0, 256], sizes = [8, 128], strides = [1, 1]} : vector<8x384xf32> to vector<8x128xf32>
    %76 = arith.mulf %65, %75 : vector<8x128xf32>
    %77 = arith.addf %74, %76 : vector<8x128xf32>
    %78 = math.tanh %77 : vector<8x128xf32>
    %cst_26 = arith.constant 1.000000e+00 : f32
    %79 = vector.broadcast %cst_26 : f32 to vector<8x128xf32>
    %80 = arith.subf %79, %73 : vector<8x128xf32>
    %81 = arith.mulf %80, %78 : vector<8x128xf32>
    %82 = arith.mulf %73, %46 : vector<8x128xf32>
    %83 = arith.addf %81, %82 : vector<8x128xf32>
    %84 = arith.truncf %83 : vector<8x128xf32> to vector<8x128xbf16>
    %85 = arith.index_cast %51 : i32 to index
    %c0_27 = arith.constant 0 : index
    %86 = vector.load %arg7[%85, %c0_27] : memref<64x128xbf16, #tpu.memory_space<vmem>>, vector<8x128xbf16>
    tpu.vector_store %arg7[%85, %c0_27], %84 {strides = array<i32>} : memref<64x128xbf16, #tpu.memory_space<vmem>>, vector<8x128xbf16>,
    %c2_i32 = arith.constant 2 : i32
    %c8_i32_28 = arith.constant 8 : i32
    %87 = arith.muli %c2_i32, %c8_i32_28 : i32
    %88 = tpu.assume_multiple %87, 8 : i32
    %89 = arith.index_cast %88 : i32 to index
    %c0_29 = arith.constant 0 : index
    %90 = vector.load %arg9[%89, %c0_29] : memref<64x384xf32, #tpu.memory_space<vmem>>, vector<8x384xf32>
    %91 = arith.truncf %83 : vector<8x128xf32> to vector<8x128xbf16>
    %cst_30 = arith.constant dense<0.000000e+00> : vector<8x384xf32>
    %92 = tpu.matmul %91, %10, %cst_30 {dimension_numbers = #tpu.dot_dimension_numbers<[1], [0], [0], [1], [0, 0, 1, 1], [], []>} : vector<8x128xbf16>, vector<128x384xbf16>, vector<8x384xf32> -> vector<8x384xf32>
    %93 = vector.broadcast %11 : vector<1x384xf32> to vector<8x384xf32>
    %94 = arith.addf %92, %93 : vector<8x384xf32>
    %95 = vector.extract_strided_slice %90 {offsets = [0, 0], sizes = [8, 128], strides = [1, 1]} : vector<8x384xf32> to vector<8x128xf32>
    %96 = vector.extract_strided_slice %94 {offsets = [0, 0], sizes = [8, 128], strides = [1, 1]} : vector<8x384xf32> to vector<8x128xf32>
    %97 = arith.addf %95, %96 : vector<8x128xf32>
    %98 = arith.negf %97 : vector<8x128xf32>
    %99 = math.exp %98 : vector<8x128xf32>
    %cst_31 = arith.constant 1.000000e+00 : f32
    %100 = vector.broadcast %cst_31 : f32 to vector<8x128xf32>
    %101 = arith.addf %100, %99 : vector<8x128xf32>
    %102 = arith.divf %100, %101 : vector<8x128xf32>
    %103 = vector.extract_strided_slice %90 {offsets = [0, 128], sizes = [8, 128], strides = [1, 1]} : vector<8x384xf32> to vector<8x128xf32>
    %104 = vector.extract_strided_slice %94 {offsets = [0, 128], sizes = [8, 128], strides = [1, 1]} : vector<8x384xf32> to vector<8x128xf32>
    %105 = arith.addf %103, %104 : vector<8x128xf32>
    %106 = arith.negf %105 : vector<8x128xf32>
    %107 = math.exp %106 : vector<8x128xf32>
    %cst_32 = arith.constant 1.000000e+00 : f32
    %108 = vector.broadcast %cst_32 : f32 to vector<8x128xf32>
    %109 = arith.addf %108, %107 : vector<8x128xf32>
    %110 = arith.divf %108, %109 : vector<8x128xf32>
    %111 = vector.extract_strided_slice %90 {offsets = [0, 256], sizes = [8, 128], strides = [1, 1]} : vector<8x384xf32> to vector<8x128xf32>
    %112 = vector.extract_strided_slice %94 {offsets = [0, 256], sizes = [8, 128], strides = [1, 1]} : vector<8x384xf32> to vector<8x128xf32>
    %113 = arith.mulf %102, %112 : vector<8x128xf32>
    %114 = arith.addf %111, %113 : vector<8x128xf32>
    %115 = math.tanh %114 : vector<8x128xf32>
    %cst_33 = arith.constant 1.000000e+00 : f32
    %116 = vector.broadcast %cst_33 : f32 to vector<8x128xf32>
    %117 = arith.subf %116, %110 : vector<8x128xf32>
    %118 = arith.mulf %117, %115 : vector<8x128xf32>
    %119 = arith.mulf %110, %83 : vector<8x128xf32>
    %120 = arith.addf %118, %119 : vector<8x128xf32>
    %121 = arith.truncf %120 : vector<8x128xf32> to vector<8x128xbf16>
    %122 = arith.index_cast %88 : i32 to index
    %c0_34 = arith.constant 0 : index
    %123 = vector.load %arg7[%122, %c0_34] : memref<64x128xbf16, #tpu.memory_space<vmem>>, vector<8x128xbf16>
    tpu.vector_store %arg7[%122, %c0_34], %121 {strides = array<i32>} : memref<64x128xbf16, #tpu.memory_space<vmem>>, vector<8x128xbf16>,
    %c3_i32 = arith.constant 3 : i32
    %c8_i32_35 = arith.constant 8 : i32
    %124 = arith.muli %c3_i32, %c8_i32_35 : i32
    %125 = tpu.assume_multiple %124, 8 : i32
    %126 = arith.index_cast %125 : i32 to index
    %c0_36 = arith.constant 0 : index
    %127 = vector.load %arg9[%126, %c0_36] : memref<64x384xf32, #tpu.memory_space<vmem>>, vector<8x384xf32>
    %128 = arith.truncf %120 : vector<8x128xf32> to vector<8x128xbf16>
    %cst_37 = arith.constant dense<0.000000e+00> : vector<8x384xf32>
    %129 = tpu.matmul %128, %10, %cst_37 {dimension_numbers = #tpu.dot_dimension_numbers<[1], [0], [0], [1], [0, 0, 1, 1], [], []>} : vector<8x128xbf16>, vector<128x384xbf16>, vector<8x384xf32> -> vector<8x384xf32>
    %130 = vector.broadcast %11 : vector<1x384xf32> to vector<8x384xf32>
    %131 = arith.addf %129, %130 : vector<8x384xf32>
    %132 = vector.extract_strided_slice %127 {offsets = [0, 0], sizes = [8, 128], strides = [1, 1]} : vector<8x384xf32> to vector<8x128xf32>
    %133 = vector.extract_strided_slice %131 {offsets = [0, 0], sizes = [8, 128], strides = [1, 1]} : vector<8x384xf32> to vector<8x128xf32>
    %134 = arith.addf %132, %133 : vector<8x128xf32>
    %135 = arith.negf %134 : vector<8x128xf32>
    %136 = math.exp %135 : vector<8x128xf32>
    %cst_38 = arith.constant 1.000000e+00 : f32
    %137 = vector.broadcast %cst_38 : f32 to vector<8x128xf32>
    %138 = arith.addf %137, %136 : vector<8x128xf32>
    %139 = arith.divf %137, %138 : vector<8x128xf32>
    %140 = vector.extract_strided_slice %127 {offsets = [0, 128], sizes = [8, 128], strides = [1, 1]} : vector<8x384xf32> to vector<8x128xf32>
    %141 = vector.extract_strided_slice %131 {offsets = [0, 128], sizes = [8, 128], strides = [1, 1]} : vector<8x384xf32> to vector<8x128xf32>
    %142 = arith.addf %140, %141 : vector<8x128xf32>
    %143 = arith.negf %142 : vector<8x128xf32>
    %144 = math.exp %143 : vector<8x128xf32>
    %cst_39 = arith.constant 1.000000e+00 : f32
    %145 = vector.broadcast %cst_39 : f32 to vector<8x128xf32>
    %146 = arith.addf %145, %144 : vector<8x128xf32>
    %147 = arith.divf %145, %146 : vector<8x128xf32>
    %148 = vector.extract_strided_slice %127 {offsets = [0, 256], sizes = [8, 128], strides = [1, 1]} : vector<8x384xf32> to vector<8x128xf32>
    %149 = vector.extract_strided_slice %131 {offsets = [0, 256], sizes = [8, 128], strides = [1, 1]} : vector<8x384xf32> to vector<8x128xf32>
    %150 = arith.mulf %139, %149 : vector<8x128xf32>
    %151 = arith.addf %148, %150 : vector<8x128xf32>
    %152 = math.tanh %151 : vector<8x128xf32>
    %cst_40 = arith.constant 1.000000e+00 : f32
    %153 = vector.broadcast %cst_40 : f32 to vector<8x128xf32>
    %154 = arith.subf %153, %147 : vector<8x128xf32>
    %155 = arith.mulf %154, %152 : vector<8x128xf32>
    %156 = arith.mulf %147, %120 : vector<8x128xf32>
    %157 = arith.addf %155, %156 : vector<8x128xf32>
    %158 = arith.truncf %157 : vector<8x128xf32> to vector<8x128xbf16>
    %159 = arith.index_cast %125 : i32 to index
    %c0_41 = arith.constant 0 : index
    %160 = vector.load %arg7[%159, %c0_41] : memref<64x128xbf16, #tpu.memory_space<vmem>>, vector<8x128xbf16>
    tpu.vector_store %arg7[%159, %c0_41], %158 {strides = array<i32>} : memref<64x128xbf16, #tpu.memory_space<vmem>>, vector<8x128xbf16>,
    %c4_i32 = arith.constant 4 : i32
    %c8_i32_42 = arith.constant 8 : i32
    %161 = arith.muli %c4_i32, %c8_i32_42 : i32
    %162 = tpu.assume_multiple %161, 8 : i32
    %163 = arith.index_cast %162 : i32 to index
    %c0_43 = arith.constant 0 : index
    %164 = vector.load %arg9[%163, %c0_43] : memref<64x384xf32, #tpu.memory_space<vmem>>, vector<8x384xf32>
    %165 = arith.truncf %157 : vector<8x128xf32> to vector<8x128xbf16>
    %cst_44 = arith.constant dense<0.000000e+00> : vector<8x384xf32>
    %166 = tpu.matmul %165, %10, %cst_44 {dimension_numbers = #tpu.dot_dimension_numbers<[1], [0], [0], [1], [0, 0, 1, 1], [], []>} : vector<8x128xbf16>, vector<128x384xbf16>, vector<8x384xf32> -> vector<8x384xf32>
    %167 = vector.broadcast %11 : vector<1x384xf32> to vector<8x384xf32>
    %168 = arith.addf %166, %167 : vector<8x384xf32>
    %169 = vector.extract_strided_slice %164 {offsets = [0, 0], sizes = [8, 128], strides = [1, 1]} : vector<8x384xf32> to vector<8x128xf32>
    %170 = vector.extract_strided_slice %168 {offsets = [0, 0], sizes = [8, 128], strides = [1, 1]} : vector<8x384xf32> to vector<8x128xf32>
    %171 = arith.addf %169, %170 : vector<8x128xf32>
    %172 = arith.negf %171 : vector<8x128xf32>
    %173 = math.exp %172 : vector<8x128xf32>
    %cst_45 = arith.constant 1.000000e+00 : f32
    %174 = vector.broadcast %cst_45 : f32 to vector<8x128xf32>
    %175 = arith.addf %174, %173 : vector<8x128xf32>
    %176 = arith.divf %174, %175 : vector<8x128xf32>
    %177 = vector.extract_strided_slice %164 {offsets = [0, 128], sizes = [8, 128], strides = [1, 1]} : vector<8x384xf32> to vector<8x128xf32>
    %178 = vector.extract_strided_slice %168 {offsets = [0, 128], sizes = [8, 128], strides = [1, 1]} : vector<8x384xf32> to vector<8x128xf32>
    %179 = arith.addf %177, %178 : vector<8x128xf32>
    %180 = arith.negf %179 : vector<8x128xf32>
    %181 = math.exp %180 : vector<8x128xf32>
    %cst_46 = arith.constant 1.000000e+00 : f32
    %182 = vector.broadcast %cst_46 : f32 to vector<8x128xf32>
    %183 = arith.addf %182, %181 : vector<8x128xf32>
    %184 = arith.divf %182, %183 : vector<8x128xf32>
    %185 = vector.extract_strided_slice %164 {offsets = [0, 256], sizes = [8, 128], strides = [1, 1]} : vector<8x384xf32> to vector<8x128xf32>
    %186 = vector.extract_strided_slice %168 {offsets = [0, 256], sizes = [8, 128], strides = [1, 1]} : vector<8x384xf32> to vector<8x128xf32>
    %187 = arith.mulf %176, %186 : vector<8x128xf32>
    %188 = arith.addf %185, %187 : vector<8x128xf32>
    %189 = math.tanh %188 : vector<8x128xf32>
    %cst_47 = arith.constant 1.000000e+00 : f32
    %190 = vector.broadcast %cst_47 : f32 to vector<8x128xf32>
    %191 = arith.subf %190, %184 : vector<8x128xf32>
    %192 = arith.mulf %191, %189 : vector<8x128xf32>
    %193 = arith.mulf %184, %157 : vector<8x128xf32>
    %194 = arith.addf %192, %193 : vector<8x128xf32>
    %195 = arith.truncf %194 : vector<8x128xf32> to vector<8x128xbf16>
    %196 = arith.index_cast %162 : i32 to index
    %c0_48 = arith.constant 0 : index
    %197 = vector.load %arg7[%196, %c0_48] : memref<64x128xbf16, #tpu.memory_space<vmem>>, vector<8x128xbf16>
    tpu.vector_store %arg7[%196, %c0_48], %195 {strides = array<i32>} : memref<64x128xbf16, #tpu.memory_space<vmem>>, vector<8x128xbf16>,
    %c5_i32 = arith.constant 5 : i32
    %c8_i32_49 = arith.constant 8 : i32
    %198 = arith.muli %c5_i32, %c8_i32_49 : i32
    %199 = tpu.assume_multiple %198, 8 : i32
    %200 = arith.index_cast %199 : i32 to index
    %c0_50 = arith.constant 0 : index
    %201 = vector.load %arg9[%200, %c0_50] : memref<64x384xf32, #tpu.memory_space<vmem>>, vector<8x384xf32>
    %202 = arith.truncf %194 : vector<8x128xf32> to vector<8x128xbf16>
    %cst_51 = arith.constant dense<0.000000e+00> : vector<8x384xf32>
    %203 = tpu.matmul %202, %10, %cst_51 {dimension_numbers = #tpu.dot_dimension_numbers<[1], [0], [0], [1], [0, 0, 1, 1], [], []>} : vector<8x128xbf16>, vector<128x384xbf16>, vector<8x384xf32> -> vector<8x384xf32>
    %204 = vector.broadcast %11 : vector<1x384xf32> to vector<8x384xf32>
    %205 = arith.addf %203, %204 : vector<8x384xf32>
    %206 = vector.extract_strided_slice %201 {offsets = [0, 0], sizes = [8, 128], strides = [1, 1]} : vector<8x384xf32> to vector<8x128xf32>
    %207 = vector.extract_strided_slice %205 {offsets = [0, 0], sizes = [8, 128], strides = [1, 1]} : vector<8x384xf32> to vector<8x128xf32>
    %208 = arith.addf %206, %207 : vector<8x128xf32>
    %209 = arith.negf %208 : vector<8x128xf32>
    %210 = math.exp %209 : vector<8x128xf32>
    %cst_52 = arith.constant 1.000000e+00 : f32
    %211 = vector.broadcast %cst_52 : f32 to vector<8x128xf32>
    %212 = arith.addf %211, %210 : vector<8x128xf32>
    %213 = arith.divf %211, %212 : vector<8x128xf32>
    %214 = vector.extract_strided_slice %201 {offsets = [0, 128], sizes = [8, 128], strides = [1, 1]} : vector<8x384xf32> to vector<8x128xf32>
    %215 = vector.extract_strided_slice %205 {offsets = [0, 128], sizes = [8, 128], strides = [1, 1]} : vector<8x384xf32> to vector<8x128xf32>
    %216 = arith.addf %214, %215 : vector<8x128xf32>
    %217 = arith.negf %216 : vector<8x128xf32>
    %218 = math.exp %217 : vector<8x128xf32>
    %cst_53 = arith.constant 1.000000e+00 : f32
    %219 = vector.broadcast %cst_53 : f32 to vector<8x128xf32>
    %220 = arith.addf %219, %218 : vector<8x128xf32>
    %221 = arith.divf %219, %220 : vector<8x128xf32>
    %222 = vector.extract_strided_slice %201 {offsets = [0, 256], sizes = [8, 128], strides = [1, 1]} : vector<8x384xf32> to vector<8x128xf32>
    %223 = vector.extract_strided_slice %205 {offsets = [0, 256], sizes = [8, 128], strides = [1, 1]} : vector<8x384xf32> to vector<8x128xf32>
    %224 = arith.mulf %213, %223 : vector<8x128xf32>
    %225 = arith.addf %222, %224 : vector<8x128xf32>
    %226 = math.tanh %225 : vector<8x128xf32>
    %cst_54 = arith.constant 1.000000e+00 : f32
    %227 = vector.broadcast %cst_54 : f32 to vector<8x128xf32>
    %228 = arith.subf %227, %221 : vector<8x128xf32>
    %229 = arith.mulf %228, %226 : vector<8x128xf32>
    %230 = arith.mulf %221, %194 : vector<8x128xf32>
    %231 = arith.addf %229, %230 : vector<8x128xf32>
    %232 = arith.truncf %231 : vector<8x128xf32> to vector<8x128xbf16>
    %233 = arith.index_cast %199 : i32 to index
    %c0_55 = arith.constant 0 : index
    %234 = vector.load %arg7[%233, %c0_55] : memref<64x128xbf16, #tpu.memory_space<vmem>>, vector<8x128xbf16>
    tpu.vector_store %arg7[%233, %c0_55], %232 {strides = array<i32>} : memref<64x128xbf16, #tpu.memory_space<vmem>>, vector<8x128xbf16>,
    %c6_i32 = arith.constant 6 : i32
    %c8_i32_56 = arith.constant 8 : i32
    %235 = arith.muli %c6_i32, %c8_i32_56 : i32
    %236 = tpu.assume_multiple %235, 8 : i32
    %237 = arith.index_cast %236 : i32 to index
    %c0_57 = arith.constant 0 : index
    %238 = vector.load %arg9[%237, %c0_57] : memref<64x384xf32, #tpu.memory_space<vmem>>, vector<8x384xf32>
    %239 = arith.truncf %231 : vector<8x128xf32> to vector<8x128xbf16>
    %cst_58 = arith.constant dense<0.000000e+00> : vector<8x384xf32>
    %240 = tpu.matmul %239, %10, %cst_58 {dimension_numbers = #tpu.dot_dimension_numbers<[1], [0], [0], [1], [0, 0, 1, 1], [], []>} : vector<8x128xbf16>, vector<128x384xbf16>, vector<8x384xf32> -> vector<8x384xf32>
    %241 = vector.broadcast %11 : vector<1x384xf32> to vector<8x384xf32>
    %242 = arith.addf %240, %241 : vector<8x384xf32>
    %243 = vector.extract_strided_slice %238 {offsets = [0, 0], sizes = [8, 128], strides = [1, 1]} : vector<8x384xf32> to vector<8x128xf32>
    %244 = vector.extract_strided_slice %242 {offsets = [0, 0], sizes = [8, 128], strides = [1, 1]} : vector<8x384xf32> to vector<8x128xf32>
    %245 = arith.addf %243, %244 : vector<8x128xf32>
    %246 = arith.negf %245 : vector<8x128xf32>
    %247 = math.exp %246 : vector<8x128xf32>
    %cst_59 = arith.constant 1.000000e+00 : f32
    %248 = vector.broadcast %cst_59 : f32 to vector<8x128xf32>
    %249 = arith.addf %248, %247 : vector<8x128xf32>
    %250 = arith.divf %248, %249 : vector<8x128xf32>
    %251 = vector.extract_strided_slice %238 {offsets = [0, 128], sizes = [8, 128], strides = [1, 1]} : vector<8x384xf32> to vector<8x128xf32>
    %252 = vector.extract_strided_slice %242 {offsets = [0, 128], sizes = [8, 128], strides = [1, 1]} : vector<8x384xf32> to vector<8x128xf32>
    %253 = arith.addf %251, %252 : vector<8x128xf32>
    %254 = arith.negf %253 : vector<8x128xf32>
    %255 = math.exp %254 : vector<8x128xf32>
    %cst_60 = arith.constant 1.000000e+00 : f32
    %256 = vector.broadcast %cst_60 : f32 to vector<8x128xf32>
    %257 = arith.addf %256, %255 : vector<8x128xf32>
    %258 = arith.divf %256, %257 : vector<8x128xf32>
    %259 = vector.extract_strided_slice %238 {offsets = [0, 256], sizes = [8, 128], strides = [1, 1]} : vector<8x384xf32> to vector<8x128xf32>
    %260 = vector.extract_strided_slice %242 {offsets = [0, 256], sizes = [8, 128], strides = [1, 1]} : vector<8x384xf32> to vector<8x128xf32>
    %261 = arith.mulf %250, %260 : vector<8x128xf32>
    %262 = arith.addf %259, %261 : vector<8x128xf32>
    %263 = math.tanh %262 : vector<8x128xf32>
    %cst_61 = arith.constant 1.000000e+00 : f32
    %264 = vector.broadcast %cst_61 : f32 to vector<8x128xf32>
    %265 = arith.subf %264, %258 : vector<8x128xf32>
    %266 = arith.mulf %265, %263 : vector<8x128xf32>
    %267 = arith.mulf %258, %231 : vector<8x128xf32>
    %268 = arith.addf %266, %267 : vector<8x128xf32>
    %269 = arith.truncf %268 : vector<8x128xf32> to vector<8x128xbf16>
    %270 = arith.index_cast %236 : i32 to index
    %c0_62 = arith.constant 0 : index
    %271 = vector.load %arg7[%270, %c0_62] : memref<64x128xbf16, #tpu.memory_space<vmem>>, vector<8x128xbf16>
    tpu.vector_store %arg7[%270, %c0_62], %269 {strides = array<i32>} : memref<64x128xbf16, #tpu.memory_space<vmem>>, vector<8x128xbf16>,
    %c7_i32 = arith.constant 7 : i32
    %c8_i32_63 = arith.constant 8 : i32
    %272 = arith.muli %c7_i32, %c8_i32_63 : i32
    %273 = tpu.assume_multiple %272, 8 : i32
    %274 = arith.index_cast %273 : i32 to index
    %c0_64 = arith.constant 0 : index
    %275 = vector.load %arg9[%274, %c0_64] : memref<64x384xf32, #tpu.memory_space<vmem>>, vector<8x384xf32>
    %276 = arith.truncf %268 : vector<8x128xf32> to vector<8x128xbf16>
    %cst_65 = arith.constant dense<0.000000e+00> : vector<8x384xf32>
    %277 = tpu.matmul %276, %10, %cst_65 {dimension_numbers = #tpu.dot_dimension_numbers<[1], [0], [0], [1], [0, 0, 1, 1], [], []>} : vector<8x128xbf16>, vector<128x384xbf16>, vector<8x384xf32> -> vector<8x384xf32>
    %278 = vector.broadcast %11 : vector<1x384xf32> to vector<8x384xf32>
    %279 = arith.addf %277, %278 : vector<8x384xf32>
    %280 = vector.extract_strided_slice %275 {offsets = [0, 0], sizes = [8, 128], strides = [1, 1]} : vector<8x384xf32> to vector<8x128xf32>
    %281 = vector.extract_strided_slice %279 {offsets = [0, 0], sizes = [8, 128], strides = [1, 1]} : vector<8x384xf32> to vector<8x128xf32>
    %282 = arith.addf %280, %281 : vector<8x128xf32>
    %283 = arith.negf %282 : vector<8x128xf32>
    %284 = math.exp %283 : vector<8x128xf32>
    %cst_66 = arith.constant 1.000000e+00 : f32
    %285 = vector.broadcast %cst_66 : f32 to vector<8x128xf32>
    %286 = arith.addf %285, %284 : vector<8x128xf32>
    %287 = arith.divf %285, %286 : vector<8x128xf32>
    %288 = vector.extract_strided_slice %275 {offsets = [0, 128], sizes = [8, 128], strides = [1, 1]} : vector<8x384xf32> to vector<8x128xf32>
    %289 = vector.extract_strided_slice %279 {offsets = [0, 128], sizes = [8, 128], strides = [1, 1]} : vector<8x384xf32> to vector<8x128xf32>
    %290 = arith.addf %288, %289 : vector<8x128xf32>
    %291 = arith.negf %290 : vector<8x128xf32>
    %292 = math.exp %291 : vector<8x128xf32>
    %cst_67 = arith.constant 1.000000e+00 : f32
    %293 = vector.broadcast %cst_67 : f32 to vector<8x128xf32>
    %294 = arith.addf %293, %292 : vector<8x128xf32>
    %295 = arith.divf %293, %294 : vector<8x128xf32>
    %296 = vector.extract_strided_slice %275 {offsets = [0, 256], sizes = [8, 128], strides = [1, 1]} : vector<8x384xf32> to vector<8x128xf32>
    %297 = vector.extract_strided_slice %279 {offsets = [0, 256], sizes = [8, 128], strides = [1, 1]} : vector<8x384xf32> to vector<8x128xf32>
    %298 = arith.mulf %287, %297 : vector<8x128xf32>
    %299 = arith.addf %296, %298 : vector<8x128xf32>
    %300 = math.tanh %299 : vector<8x128xf32>
    %cst_68 = arith.constant 1.000000e+00 : f32
    %301 = vector.broadcast %cst_68 : f32 to vector<8x128xf32>
    %302 = arith.subf %301, %295 : vector<8x128xf32>
    %303 = arith.mulf %302, %300 : vector<8x128xf32>
    %304 = arith.mulf %295, %268 : vector<8x128xf32>
    %305 = arith.addf %303, %304 : vector<8x128xf32>
    %306 = arith.truncf %305 : vector<8x128xf32> to vector<8x128xbf16>
    %307 = arith.index_cast %273 : i32 to index
    %c0_69 = arith.constant 0 : index
    %308 = vector.load %arg7[%307, %c0_69] : memref<64x128xbf16, #tpu.memory_space<vmem>>, vector<8x128xbf16>
    tpu.vector_store %arg7[%307, %c0_69], %306 {strides = array<i32>} : memref<64x128xbf16, #tpu.memory_space<vmem>>, vector<8x128xbf16>,
    %c8_i32_70 = arith.constant 8 : i32
    %c0_71 = arith.constant 0 : index
    %c0_72 = arith.constant 0 : index
    %309 = vector.load %arg10[%c0_71, %c0_72] : memref<8x128xf32, #tpu.memory_space<vmem>>, vector<8x128xf32>
    tpu.vector_store %arg10[%c0_71, %c0_72], %305 {strides = array<i32>} : memref<8x128xf32, #tpu.memory_space<vmem>>, vector<8x128xf32>,
    %c0_i32_73 = arith.constant 0 : i32
    %310 = arith.cmpi eq, %arg0, %c0_i32_73 : i32
    %311 = arith.extui %310 : i1 to i32
    %c0_i32_74 = arith.constant 0 : i32
    %312 = arith.cmpi ne, %311, %c0_i32_74 : i32
    scf.if %312 {
      %c0_75 = arith.constant 0 : index
      %c0_76 = arith.constant 0 : index
      %313 = vector.load %arg8[%c0_75, %c0_76] : memref<8x128xf32, #tpu.memory_space<vmem>>, vector<8x128xf32>
      tpu.vector_store %arg8[%c0_75, %c0_76], %305 {strides = array<i32>} : memref<8x128xf32, #tpu.memory_space<vmem>>, vector<8x128xf32>,
    } else {
    }
    return
  }
  func.func @transform_0(%arg0: i32) -> (i32, i32) {
    %c0_i32 = arith.constant 0 : i32
    %c0_i32_0 = arith.constant 0 : i32
    return %arg0, %c0_i32 : i32, i32
  }
  func.func @transform_1(%arg0: i32) -> (i32, i32) {
    %c0_i32 = arith.constant 0 : i32
    %c0_i32_0 = arith.constant 0 : i32
    %c0_i32_1 = arith.constant 0 : i32
    return %c0_i32, %c0_i32_0 : i32, i32
  }
  func.func @transform_2(%arg0: i32) -> (i32, i32) {
    %c0_i32 = arith.constant 0 : i32
    %c0_i32_0 = arith.constant 0 : i32
    %c0_i32_1 = arith.constant 0 : i32
    return %c0_i32, %c0_i32_0 : i32, i32
  }
  func.func @transform_3(%arg0: i32) -> (i32, i32) {
    %c0_i32 = arith.constant 0 : i32
    %c0_i32_0 = arith.constant 0 : i32
    %c0_i32_1 = arith.constant 0 : i32
    return %c0_i32, %c0_i32_0 : i32, i32
  }
  func.func @transform_4(%arg0: i32) -> (i32, i32) {
    %c0_i32 = arith.constant 0 : i32
    %c0_i32_0 = arith.constant 0 : i32
    %c0_i32_1 = arith.constant 0 : i32
    return %c0_i32, %c0_i32_0 : i32, i32
  }
  func.func @transform_5(%arg0: i32) -> (i32, i32) {
    %c0_i32 = arith.constant 0 : i32
    %c0_i32_0 = arith.constant 0 : i32
    %c0_i32_1 = arith.constant 0 : i32
    return %c0_i32, %c0_i32_0 : i32, i32
  }
  func.func @transform_6(%arg0: i32) -> (i32, i32) {
    %c0_i32 = arith.constant 0 : i32
    %c0_i32_0 = arith.constant 0 : i32
    return %arg0, %c0_i32 : i32, i32
  }
  func.func @transform_7(%arg0: i32) -> (i32, i32) {
    %c0_i32 = arith.constant 0 : i32
    %c0_i32_0 = arith.constant 0 : i32
    %c0_i32_1 = arith.constant 0 : i32
    return %c0_i32, %c0_i32_0 : i32, i32
  }
}

</mosaic_0001>

<bundles_post_ra>
// kernel: tpu_custom_call.1
= control target key start
LH: loop header
LB: loop body
LE: loop exit
PB: predicated region body
PF: predicated region fallthrough
CT: control target
= control target key end

     0   :  { %13 = vsyncpa [#allocation5], 0  ;;  %s2844_s0 = inlined_call_operand.hbm [shape: bf16[64,128], index: 0, kind: input, shape index: {}]   ;;  %s2845_s1 = inlined_call_operand.hbm [shape: f32[8,128], index: 1, kind: input, shape index: {}]   ;;  %s2846_s2 = inlined_call_operand.hbm [shape: bf16[128,384], index: 2, kind: input, shape index: {}]   ;;  %s2847_s3 = inlined_call_operand.vmem [shape: f32[1,384], index: 3, kind: input, shape index: {}]   ;;  %s2848_s4 = inlined_call_operand.hbm [shape: bf16[128,384], index: 4, kind: input, shape index: {}]   ;;  %s2849_s5 = inlined_call_operand.vmem [shape: f32[1,384], index: 5, kind: input, shape index: {}]   ;;  %s2850_s6 = inlined_call_operand.hbm [shape: bf16[64,128], index: 6, kind: output, shape index: {0}]   ;;  %s2851_s7 = inlined_call_operand.hbm [shape: f32[8,128], index: 7, kind: output, shape index: {1}]  }
   0x1   :  { %14 = vsyncpa [#allocation8], 0 }
   0x2   :  { %15 = vsyncpa [#allocation11], 0 }
   0x3   :  { %16 = vsyncpa [#allocation6], 0 }
   0x4   :  { %17 = vsyncpa [#allocation14], 0  ;;  %s2232_s24 = smov [#allocation7]   ;;  %s2233_s26 = smov [#allocation4]  }
   0x5   :  { %s36_s25 = sshll.u32 %s2232_s24, 4  ;;  %s23_s27 = sshll.u32 %s2233_s26, 4  ;;  %s37_s25 = int_to_ptr.vmem [resolvable:$true] %s36_s25  ;;  %s2285_s27 = int_to_ptr.vmem [resolvable:$true] %s23_s27 }
   0x6   :  { %s2090_s30 = scalar_lea.hbm %s2845_s1, 128 }
   0x7   :  { %p2091_p0 = scmp.ne.s32.totalorder %s2845_s1, %s2090_s30  ;;  %p2094_p1 = scmp.lt.u32.totalorder %s2090_s30, %s2845_s1 }
   0x9   :  { %p2096_p2 = pnand %p2094_p1, %p2091_p0 }
   0xb   :  { %2099 = shalt.err (!%p2096_p2)
}
   0xc   :  { %s2100_s12 = scalar_lea.vmem %s37_s25, 128  ;;  %p2105_p4 = scmp.lt.s32.totalorder %s37_s25, %s37_s25 }
   0xd   :  { %p2101_p3 = scmp.ne.s32.totalorder %s37_s25, %s2100_s12  ;;  %p2106_p5 = scmp.lt.s32.totalorder %s2100_s12, %s2100_s12 }
   0xf   :  { %p2107_p6 = por %p2106_p5, %p2105_p4 }
  0x11   :  { %p2108_p7 = pnand %p2107_p6, %p2101_p3 }
  0x13   :  { %2111 = shalt.err (!%p2108_p7)
}
  0x14   :  { %39 = dma.hbm_to_vmem [thread:$0]  %s2845_s1, 128, %s37_s25, [#allocation8]  }
  0x15   :  { %s2112_s17 = scalar_lea.hbm %s2844_s0, 512 }
  0x16   :  { %p2113_p8 = scmp.ne.s32.totalorder %s2844_s0, %s2112_s17  ;;  %p2116_p9 = scmp.lt.u32.totalorder %s2112_s17, %s2844_s0 }
  0x18   :  { %p2118_p10 = pnand %p2116_p9, %p2113_p8 }
  0x1a   :  { %2121 = shalt.err (!%p2118_p10)
}
  0x1b   :  { %s2122_s22 = scalar_lea.vmem %s2285_s27, 512  ;;  %p2127_p12 = scmp.lt.s32.totalorder %s2285_s27, %s2285_s27 }
  0x1c   :  { %p2123_p11 = scmp.ne.s32.totalorder %s2285_s27, %s2122_s22  ;;  %p2128_p13 = scmp.lt.s32.totalorder %s2122_s22, %s2122_s22 }
  0x1e   :  { %p2129_p0 = por %p2128_p13, %p2127_p12 }
  0x20   :  { %p2130_p1 = pnand %p2129_p0, %p2123_p11 }
  0x22   :  { %2133 = shalt.err (!%p2130_p1)
}
  0x23   :  { %s2234_s1 = smov 64   ;;  %s2235_s23 = smov 4  }
  0x24   :  { %29 = dma.hbm_to_vmem [thread:$0]  %s2844_s0, 512, %s2285_s27, [#allocation5], %s2234_s1, %s2234_s1, %s2235_s23  }
  0x25   :  { %s2236_s26 = smov [#allocation9]   ;;  %s2134_s8 = scalar_lea.hbm %s2846_s2, 3072 }
  0x26   :  { %s45_s28 = sshll.u32 %s2236_s26, 4  ;;  %p2135_p2 = scmp.ne.s32.totalorder %s2846_s2, %s2134_s8  ;;  %s46_s28 = int_to_ptr.vmem [resolvable:$true] %s45_s28 }
  0x27   :  { %p2138_p3 = scmp.lt.u32.totalorder %s2134_s8, %s2846_s2 }
  0x29   :  { %p2140_p4 = pnand %p2138_p3, %p2135_p2 }
  0x2b   :  { %2143 = shalt.err (!%p2140_p4)
}
  0x2c   :  { %s2144_s13 = scalar_lea.vmem %s46_s28, 3072  ;;  %p2149_p6 = scmp.lt.s32.totalorder %s46_s28, %s46_s28 }
  0x2d   :  { %p2145_p5 = scmp.ne.s32.totalorder %s46_s28, %s2144_s13  ;;  %p2150_p7 = scmp.lt.s32.totalorder %s2144_s13, %s2144_s13 }
  0x2f   :  { %p2151_p8 = por %p2150_p7, %p2149_p6 }
  0x31   :  { %p2152_p9 = pnand %p2151_p8, %p2145_p5 }
  0x33   :  { %2155 = shalt.err (!%p2152_p9)
}
  0x34   :  { %s2237_s0 = smov 192   ;;  %s2238_s27 = smov 12  }
  0x35   :  { %51 = dma.hbm_to_vmem [thread:$0]  %s2846_s2, 3072, %s46_s28, [#allocation8], %s2237_s0, %s2237_s0, %s2238_s27  }
  0x36   :  { %s2239_s16 = smov [#allocation10]   ;;  %s2156_s20 = scalar_lea.hbm %s2848_s4, 3072 }
  0x37   :  { %s59_s17 = sshll.u32 %s2239_s16, 4  ;;  %p2157_p10 = scmp.ne.s32.totalorder %s2848_s4, %s2156_s20  ;;  %s60_s17 = int_to_ptr.vmem [resolvable:$true] %s59_s17 }
  0x38   :  { %p2160_p11 = scmp.lt.u32.totalorder %s2156_s20, %s2848_s4 }
  0x3a   :  { %p2162_p12 = pnand %p2160_p11, %p2157_p10 }
  0x3c   :  { %2165 = shalt.err (!%p2162_p12)
}
  0x3d   :  { %s2166_s26 = scalar_lea.vmem %s60_s17, 3072  ;;  %p2171_p0 = scmp.lt.s32.totalorder %s60_s17, %s60_s17 }
  0x3e   :  { %p2167_p13 = scmp.ne.s32.totalorder %s60_s17, %s2166_s26  ;;  %p2172_p1 = scmp.lt.s32.totalorder %s2166_s26, %s2166_s26 }
  0x40   :  { %p2173_p2 = por %p2172_p1, %p2171_p0 }
  0x42   :  { %p2174_p3 = pnand %p2173_p2, %p2167_p13 }
  0x44   :  { %2177 = shalt.err (!%p2174_p3)
}
  0x45   :  { %65 = dma.hbm_to_vmem [thread:$0]  %s2848_s4, 3072, %s60_s17, [#allocation11], %s2237_s0, %s2237_s0, %s2238_s27  }
  0x46   :  { %2222 = dma.done.wait [#allocation5], 512  }
  0x47   :  { %2223 = vsyncadd [#allocation5], 4294966784 }
  0x48   :  { %2224 = dma.done.wait [#allocation8], 3200  }
  0x49   :  { %2225 = vsyncadd [#allocation8], 4294964096 }
  0x4a   :  { %2226 = dma.done.wait [#allocation11], 3072  }
  0x4b   :  { %2227 = vsyncadd [#allocation11], 4294964224  ;;  %v2852_v0 = vmov 0   ;;  %v1918_v1 = vld [vmem:[#allocation9 + $0x4] ss:$12 sps:$4 sm:$0xff]   ;;  %v1944_v12 = vld [vmem:[#allocation4] sm:$0xff]   ;;  %v129_v56 = vlaneseq }
  0x4c   :  { %328 = vmatprep.mubr.bf16.mxu0 %v2852_v0  ;;  %v1920_v2 = vld [vmem:[#allocation9] ss:$12 sps:$4 sm:$0xff]   ;;  %296 = vmatprep.subr.bf16.mxu0 %v1918_v1  ;;  %v1921_v3 = vld [vmem:[#allocation9 + $0x1c] ss:$12 sps:$4 sm:$0xff]   ;;  %v1923_v4 = vld [vmem:[#allocation9 + $0x18] ss:$12 sps:$4 sm:$0xff]  }
  0x4d   :  { %297 = vmatpush1.bf16.msra.mxu0 %v1920_v2  ;;  %v1924_v5 = vld [vmem:[#allocation9 + $0x34] ss:$12 sps:$4 sm:$0xff]   ;;  %v1926_v6 = vld [vmem:[#allocation9 + $0x30] ss:$12 sps:$4 sm:$0xff]   ;;  %v1927_v7 = vld [vmem:[#allocation9 + $0x4c] ss:$12 sps:$4 sm:$0xff]   ;;  %1737 = vmatprep.mubr.bf16.mxu1 %v1944_v12 }
  0x4e   :  { %298 = vmatprep.subr.bf16.mxu0 %v1921_v3  ;;  %v1939_v8 = vld [vmem:[#allocation9 + $0x8] ss:$12 sps:$4 sm:$0xff]   ;;  %v1930_v10 = vld [vmem:[#allocation9 + $0x64] ss:$12 sps:$4 sm:$0xff]   ;;  %v1943_v11 = vld [vmem:[#allocation9 + $0x20] ss:$12 sps:$4 sm:$0xff]  }
  0x4f   :  { %v1929_v9 = vld [vmem:[#allocation9 + $0x48] ss:$12 sps:$4 sm:$0xff]   ;;  %1721 = vmatprep.subr.bf16.mxu1 %v1939_v8  ;;  %v1932_v13 = vld [vmem:[#allocation9 + $0x60] ss:$12 sps:$4 sm:$0xff]   ;;  %v1948_v14 = vld [vmem:[#allocation9 + $0x38] ss:$12 sps:$4 sm:$0xff]  }
  0x50   :  { %1722 = vmatpush3.bf16.msra.mxu1 %v1939_v8  ;;  %v1933_v15 = vld [vmem:[#allocation9 + $0x7c] ss:$12 sps:$4 sm:$0xff]   ;;  %v1935_v17 = vld [vmem:[#allocation9 + $0x78] ss:$12 sps:$4 sm:$0xff]   ;;  %v1936_v18 = vld [vmem:[#allocation9 + $0x94] ss:$12 sps:$4 sm:$0xff]  }
  0x51   :  { %299 = vmatpush1.bf16.msra.mxu0 %v1923_v4  ;;  %1723 = vmatprep.subr.bf16.mxu1 %v1943_v11  ;;  %v1952_v16 = vld [vmem:[#allocation9 + $0x50] ss:$12 sps:$4 sm:$0xff]   ;;  %v1957_v19 = vld [vmem:[#allocation9 + $0x68] ss:$12 sps:$4 sm:$0xff]   ;;  %v1940_v21 = vld [vmem:[#allocation9 + $0xac] ss:$12 sps:$4 sm:$0xff]  }
  0x52   :  { %300 = vmatprep.subr.bf16.mxu0 %v1924_v5  ;;  %v1938_v20 = vld [vmem:[#allocation9 + $0x90] ss:$12 sps:$4 sm:$0xff]   ;;  %v1961_v22 = vld [vmem:[#allocation9 + $0x80] ss:$12 sps:$4 sm:$0xff]   ;;  %v1942_v23 = vld [vmem:[#allocation9 + $0xa8] ss:$12 sps:$4 sm:$0xff]  }
  0x53   :  { %v2344_v24 = vld [vmem:[#allocation10 + $0x4] ss:$12 sps:$4 sm:$0xff]   ;;  %v2346_v26 = vld [vmem:[#allocation10] ss:$12 sps:$4 sm:$0xff]   ;;  %v2349_v27 = vld [vmem:[#allocation10 + $0x1c] ss:$12 sps:$4 sm:$0xff]  }
  0x54   :  { %1724 = vmatpush3.bf16.msra.mxu1 %v1943_v11  ;;  %v1966_v25 = vld [vmem:[#allocation9 + $0x98] ss:$12 sps:$4 sm:$0xff]   ;;  %v1970_v28 = vld [vmem:[#allocation9 + $0xb0] ss:$12 sps:$4 sm:$0xff]   ;;  %v2356_v30 = vld [vmem:[#allocation10 + $0x34] ss:$12 sps:$4 sm:$0xff]  }
  0x55   :  { %301 = vmatpush1.bf16.msra.mxu0 %v1926_v6  ;;  %1725 = vmatprep.subr.bf16.mxu1 %v1948_v14  ;;  %v2352_v29 = vld [vmem:[#allocation10 + $0x18] ss:$12 sps:$4 sm:$0xff]   ;;  %v2359_v32 = vld [vmem:[#allocation10 + $0x30] ss:$12 sps:$4 sm:$0xff]   ;;  %v2364_v34 = vld [vmem:[#allocation10 + $0x8] ss:$12 sps:$4 sm:$0xff]  }
  0x56   :  { %302 = vmatprep.subr.bf16.mxu0 %v1927_v7  ;;  %v1953_v31 = vld [vmem:[#allocation4 + $0x8] sm:$0xff]   ;;  %v2362_v33 = vld [vmem:[#allocation10 + $0x4c] ss:$12 sps:$4 sm:$0xff]   ;;  %v2854_v35 = vmov 0.0   ;;  %v2368_v36 = vld [vmem:[#allocation10 + $0x48] ss:$12 sps:$4 sm:$0xff]  }
  0x57   :  { %v1962_v37 = vld [vmem:[#allocation4 + $0x10] sm:$0xff]   ;;  %v2372_v38 = vld [vmem:[#allocation10 + $0x64] ss:$12 sps:$4 sm:$0xff]   ;;  %v2393_v45 = vld [vmem:[#allocation10 + $0x94] ss:$12 sps:$4 sm:$0xff]   ;;  %vm2242_vm0 = vmmov 0  }
  0x58   :  { %1726 = vmatpush3.bf16.msra.mxu1 %v1948_v14  ;;  %v2375_v39 = vld [vmem:[#allocation10 + $0x20] ss:$12 sps:$4 sm:$0xff]   ;;  %v2382_v41 = vld [vmem:[#allocation10 + $0x7c] ss:$12 sps:$4 sm:$0xff]   ;;  %v2385_v42 = vld [vmem:[#allocation10 + $0x38] ss:$12 sps:$4 sm:$0xff]  }
  0x59   :  { %303 = vmatpush1.bf16.msra.mxu0 %v1929_v9  ;;  %1727 = vmatprep.subr.bf16.mxu1 %v1952_v16  ;;  %v2379_v40 = vld [vmem:[#allocation10 + $0x60] ss:$12 sps:$4 sm:$0xff]   ;;  %v1971_v43 = vld [vmem:[#allocation4 + $0x18] sm:$0xff]   ;;  %v2389_v44 = vld [vmem:[#allocation10 + $0x78] ss:$12 sps:$4 sm:$0xff]   ;;  %v2471_v57 = vshrl.u32 %v129_v56, 7 }
  0x5a   :  { %304 = vmatprep.subr.bf16.mxu0 %v1930_v10  ;;  %v2396_v46 = vld [vmem:[#allocation10 + $0x50] ss:$12 sps:$4 sm:$0xff]   ;;  %v2405_v48 = vld [vmem:[#allocation10 + $0xac] ss:$12 sps:$4 sm:$0xff]   ;;  %v2408_v49 = vld [vmem:[#allocation10 + $0x68] ss:$12 sps:$4 sm:$0xff]  }
  0x5b   :  { %v2402_v47 = vld [vmem:[#allocation10 + $0x90] ss:$12 sps:$4 sm:$0xff]   ;;  %v2412_v50 = vld [vmem:[#allocation10 + $0xa8] ss:$12 sps:$4 sm:$0xff]   ;;  %v2419_v52 = vld [vmem:[#allocation10 + $0x80] ss:$12 sps:$4 sm:$0xff]  }
  0x5c   :  { %1728 = vmatpush3.bf16.msra.mxu1 %v1952_v16  ;;  %v2415_v51 = vld [vmem:[#allocation7] sm:$0xff]  ;;  %v131_v58 = vsub.s32 0, %v2471_v57  ;;  %v135_v60 = vsub.s32 1, %v2471_v57  ;;  %v2856_v5 = vsub.s32 2, %v2471_v57  ;;  %s2244_s9 = smov [#allocation12]  }
  0x5d   :  { %305 = vmatpush1.bf16.msra.mxu0 %v1932_v13  ;;  %1729 = vmatprep.subr.bf16.mxu1 %v1957_v19  ;;  %v498_v53 = vpack.c.bf16 %v2415_v51, %v2415_v51  ;;  %v2427_v54 = vld [vmem:[#allocation10 + $0x98] ss:$12 sps:$4 sm:$0xff]   ;;  %v2434_v55 = vld [vmem:[#allocation10 + $0xb0] ss:$12 sps:$4 sm:$0xff]   ;;  %s1534_s10 = sshll.u32 %s2244_s9, 4  ;;  %s2810_s10 = int_to_ptr.vmem [resolvable:$true] %s1534_s10 }
  0x5e   :  { %306 = vmatprep.subr.bf16.mxu0 %v1933_v15  ;;  %v127_v59 = vld [vmem:[%s2847_s3] sm:$0x7] }
  0x5f   :  { %v132_v62 = vrot.slane %v127_v59, %v131_v58  ;;  %v136_v1 = vrot.slane %v127_v59, %v135_v60  ;;  %v2485_v7 = vrot.slane %v127_v59, %v2856_v5 }
  0x60   :  { %1730 = vmatpush3.bf16.msra.mxu1 %v1957_v19 }
  0x61   :  { %307 = vmatpush1.bf16.msra.mxu0 %v1935_v17  ;;  %1731 = vmatprep.subr.bf16.mxu1 %v1961_v22 }
  0x62   :  { %308 = vmatprep.subr.bf16.mxu0 %v1936_v18 }
  0x64   :  { %1732 = vmatpush3.bf16.msra.mxu1 %v1961_v22 }
  0x65   :  { %309 = vmatpush1.bf16.msra.mxu0 %v1938_v20  ;;  %1733 = vmatprep.subr.bf16.mxu1 %v1966_v25 }
  0x66   :  { %310 = vmatprep.subr.bf16.mxu0 %v1940_v21 }
  0x68   :  { %1734 = vmatpush3.bf16.msra.mxu1 %v1966_v25 }
  0x69   :  { %311 = vmatpush1.bf16.msra.mxu0 %v1942_v23  ;;  %1735 = vmatprep.subr.bf16.mxu1 %v1970_v28 }
  0x6a   :  { %643 = vmatprep.subr.bf16.mxu0 %v2344_v24 }
  0x6c   :  { %329 = vmatmul.mubr.bf16.vlgmr.msra.gmra.mrb[0].mxu0 %v1944_v12  ;;  %1736 = vmatpush3.bf16.msra.mxu1 %v1970_v28 }
  0x6d   :  { %644 = vmatpush1.bf16.msra.mxu0 %v2346_v26  ;;  %338 = vmatprep.mubr.bf16.mxu0 %v2852_v0 }
  0x6e   :  { %645 = vmatprep.subr.bf16.mxu0 %v2349_v27  ;;  %1745 = vmatprep.subr.bf16.mxu1 %v2854_v35 }
  0x6f   :  { %1738 = vmatmul.mubr.bf16.vlgmr.msra.gmra.mrb[0].mxu1 %v1953_v31 }
  0x70   :  { %1746 = vmatpush3.bf16.msra.mxu1 %v2364_v34  ;;  %1741 = vmatprep.mubr.bf16.mxu1 %v1962_v37 }
  0x71   :  { %646 = vmatpush1.bf16.msra.mxu0 %v2352_v29  ;;  %1747 = vmatprep.subr.bf16.mxu1 %v2854_v35 }
  0x72   :  { %647 = vmatprep.subr.bf16.mxu0 %v2356_v30 }
  0x74   :  { %339 = vmatmul.mubr.bf16.gmra.mrb[4].mxu0 %v1953_v31  ;;  %1748 = vmatpush3.bf16.msra.mxu1 %v2375_v39 }
  0x75   :  { %648 = vmatpush1.bf16.msra.mxu0 %v2359_v32  ;;  %348 = vmatprep.mubr.bf16.mxu0 %v2852_v0 }
  0x76   :  { %649 = vmatprep.subr.bf16.mxu0 %v2362_v33  ;;  %1749 = vmatprep.subr.bf16.mxu1 %v2854_v35 }
  0x77   :  { %1742 = vmatmul.mubr.bf16.gmra.mrb[4].mxu1 %v1971_v43 }
  0x78   :  { %1750 = vmatpush3.bf16.msra.mxu1 %v2385_v42  ;;  %1761 = vmatprep.mubr.msk.bf16.mxu1 %vm2242_vm0, %v2854_v35 }
  0x79   :  { %650 = vmatpush1.bf16.msra.mxu0 %v2368_v36  ;;  %1751 = vmatprep.subr.bf16.mxu1 %v2854_v35 }
  0x7a   :  { %651 = vmatprep.subr.bf16.mxu0 %v2372_v38 }
  0x7c   :  { %349 = vmatmul.mubr.bf16.gmra.mrb[8].mxu0 %v1962_v37  ;;  %1752 = vmatpush3.bf16.msra.mxu1 %v2396_v46 }
  0x7d   :  { %652 = vmatpush1.bf16.msra.mxu0 %v2379_v40  ;;  %358 = vmatprep.mubr.bf16.mxu0 %v2852_v0 }
  0x7e   :  { %653 = vmatprep.subr.bf16.mxu0 %v2382_v41  ;;  %1753 = vmatprep.subr.bf16.mxu1 %v2854_v35 }
  0x80   :  { %1754 = vmatpush3.bf16.msra.mxu1 %v2408_v49 }
  0x81   :  { %654 = vmatpush1.bf16.msra.mxu0 %v2389_v44  ;;  %1755 = vmatprep.subr.bf16.mxu1 %v2854_v35 }
  0x82   :  { %655 = vmatprep.subr.bf16.mxu0 %v2393_v45 }
  0x84   :  { %359 = vmatmul.mubr.bf16.gmra.mrb[12].mxu0 %v1971_v43  ;;  %1756 = vmatpush3.bf16.msra.mxu1 %v2419_v52 }
  0x85   :  { %656 = vmatpush1.bf16.msra.mxu0 %v2402_v47  ;;  %675 = vmatprep.mubr.bf16.mxu0 %v2852_v0 }
  0x86   :  { %657 = vmatprep.subr.bf16.mxu0 %v2405_v48  ;;  %1757 = vmatprep.subr.bf16.mxu1 %v2854_v35 }
  0x88   :  { %1758 = vmatpush3.bf16.msra.mxu1 %v2427_v54 }
  0x89   :  { %658 = vmatpush1.bf16.msra.mxu0 %v2412_v50  ;;  %1759 = vmatprep.subr.bf16.mxu1 %v2854_v35 }
  0x8a   :  { %753 = vmatprep.subr.bf16.mxu0 %v2344_v24 }
  0x8c   :  { %676 = vmatmul.mubr.bf16.vlgmr.msra.gmra.mrb[16].mxu0 %v498_v53  ;;  %1760 = vmatpush3.bf16.msra.mxu1 %v2434_v55 }
  0x8d   :  { %754 = vmatpush1.bf16.msra.mxu0 %v2346_v26  ;;  %785 = vmatprep.mubr.bf16.mxu0 %v2852_v0 }
  0x8e   :  { %755 = vmatprep.subr.bf16.mxu0 %v2349_v27  ;;  %1765 = vmatprep.subr.bf16.mxu1 %v2854_v35 }
  0x8f   :  { %1762 = vmatmul.mubr.bf16.vlgmr.msra.gmra.mrb[8].mxu1 %v498_v53 }
  0x90   :  { %1766 = vmatpush3.bf16.msra.mxu1 %v2364_v34  ;;  %1781 = vmatprep.mubr.msk.bf16.mxu1 %vm2242_vm0, %v2854_v35 }
  0x91   :  { %756 = vmatpush1.bf16.msra.mxu0 %v2352_v29  ;;  %1767 = vmatprep.subr.bf16.mxu1 %v2854_v35 }
  0x92   :  { %757 = vmatprep.subr.bf16.mxu0 %v2356_v30 }
  0x94   :  { %1768 = vmatpush3.bf16.msra.mxu1 %v2375_v39 }
  0x95   :  { %758 = vmatpush1.bf16.msra.mxu0 %v2359_v32  ;;  %1769 = vmatprep.subr.bf16.mxu1 %v2854_v35 }
  0x96   :  { %759 = vmatprep.subr.bf16.mxu0 %v2362_v33 }
  0x98   :  { %1770 = vmatpush3.bf16.msra.mxu1 %v2385_v42 }
  0x99   :  { %760 = vmatpush1.bf16.msra.mxu0 %v2368_v36  ;;  %1771 = vmatprep.subr.bf16.mxu1 %v2854_v35 }
  0x9a   :  { %761 = vmatprep.subr.bf16.mxu0 %v2372_v38 }
  0x9c   :  { %1772 = vmatpush3.bf16.msra.mxu1 %v2396_v46 }
  0x9d   :  { %762 = vmatpush1.bf16.msra.mxu0 %v2379_v40  ;;  %1773 = vmatprep.subr.bf16.mxu1 %v2854_v35 }
  0x9e   :  { %763 = vmatprep.subr.bf16.mxu0 %v2382_v41 }
  0xa0   :  { %1774 = vmatpush3.bf16.msra.mxu1 %v2408_v49 }
  0xa1   :  { %764 = vmatpush1.bf16.msra.mxu0 %v2389_v44  ;;  %1775 = vmatprep.subr.bf16.mxu1 %v2854_v35 }
  0xa2   :  { %765 = vmatprep.subr.bf16.mxu0 %v2393_v45 }
  0xa4   :  { %1776 = vmatpush3.bf16.msra.mxu1 %v2419_v52 }
  0xa5   :  { %766 = vmatpush1.bf16.msra.mxu0 %v2402_v47  ;;  %1777 = vmatprep.subr.bf16.mxu1 %v2854_v35 }
  0xa6   :  { %767 = vmatprep.subr.bf16.mxu0 %v2405_v48 }
  0xa8   :  { %1778 = vmatpush3.bf16.msra.mxu1 %v2427_v54 }
  0xa9   :  { %768 = vmatpush1.bf16.msra.mxu0 %v2412_v50  ;;  %1779 = vmatprep.subr.bf16.mxu1 %v2854_v35 }
  0xaa   :  { %864 = vmatprep.subr.bf16.mxu0 %v2344_v24 }
  0xac   :  { %1780 = vmatpush3.bf16.msra.mxu1 %v2434_v55 }
  0xad   :  { %1785 = vmatprep.subr.bf16.mxu1 %v2854_v35 }
 0x13f   :  { %v330_v61 = vpop.f32.mrb[0].mxu0 }
 0x140   :  { %v332_v63 = vpop.f32.mrb[1].mxu0 }
 0x141   :  { %v334_v2 = vpop.f32.mrb[2].mxu0 }
 0x142   :  { %v2478_v3 = vadd.f32 %v334_v2, %v132_v62  ;;  %v336_v4 = vpop.f32.mrb[3].mxu0  ;;  %v1739_v13 = vpop.f32.mrb[0].mxu1 }
 0x143   :  { %v2481_v6 = vadd.f32 %v336_v4, %v136_v1  ;;  %v2494_v16 = vadd.f32 %v1739_v13, %v2485_v7  ;;  %v403_v17 = vpop.f32.mrb[1].mxu1 }
 0x144   :  { %v1740_v19 = vpop.f32.mrb[2].mxu1 }
 0x145   :  { %v2499_v20 = vadd.f32 %v1740_v19, %v2485_v7  ;;  %v406_v21 = vpop.f32.mrb[3].mxu1 }
 0x146   :  { %v2502_v22 = vadd.f32 %v406_v21, %v2485_v7 }
 0x147   :  { %v340_v8 = vpop.f32.mrb[4].mxu0 }
 0x148   :  { %v2487_v9 = vadd.f32 %v340_v8, %v132_v62  ;;  %v342_v10 = vpop.f32.mrb[5].mxu0 }
 0x149   :  { %v2489_v11 = vadd.f32 %v342_v10, %v136_v1  ;;  %v344_v12 = vpop.f32.mrb[6].mxu0 }
 0x14a   :  { %v2491_v14 = vadd.f32 %v344_v12, %v132_v62  ;;  %v346_v15 = vpop.f32.mrb[7].mxu0  ;;  %v1743_v43 = vpop.f32.mrb[4].mxu1 }
 0x14b   :  { %v2496_v18 = vadd.f32 %v346_v15, %v136_v1  ;;  %v2511_v59 = vadd.f32 %v1743_v43, %v2485_v7  ;;  %v419_v2 = vpop.f32.mrb[5].mxu1  ;;  %v490_v43 = vld [vmem:[%s2849_s5] sm:$0x7]  ;;  %s2243_s5 = smov [#allocation13]  }
 0x14c   :  { %v2516_v8 = vadd.f32 %v419_v2, %v2485_v7  ;;  %v1744_v10 = vpop.f32.mrb[6].mxu1  ;;  %v2535_v0 = vrot.slane %v490_v43, %v131_v58  ;;  %s1547_s8 = sshll.u32 %s2243_s5, 4  ;;  %s1548_s8 = int_to_ptr.vmem [resolvable:$true] %s1547_s8 }
 0x14d   :  { %2858 = vst [vmem:[#allocation21_spill] sm:$0xff] %v2511_v59  ;;  %v2519_v12 = vadd.f32 %v1744_v10, %v2485_v7  ;;  %v422_v13 = vpop.f32.mrb[7].mxu1  ;;  %s2178_s11 = scalar_lea.vmem %s1548_s8, 128  ;;  %p2183_p5 = scmp.lt.s32.totalorder %s1548_s8, %s1548_s8 }
 0x14e   :  { %v2522_v15 = vadd.f32 %v422_v13, %v2485_v7  ;;  %v2537_v13 = vrot.slane %v490_v43, %v135_v60  ;;  %p2179_p4 = scmp.ne.s32.totalorder %s1548_s8, %s2178_s11  ;;  %p2184_p6 = scmp.lt.s32.totalorder %s2178_s11, %s2178_s11 }
 0x14f   :  { %v350_v23 = vpop.f32.mrb[8].mxu0  ;;  %2860 = vst [vmem:[#allocation23_spill] sm:$0xff] %v2519_v12  ;;  %v333_v12 = vadd.f32 %v332_v63, %v136_v1 }
 0x150   :  { %v2504_v25 = vadd.f32 %v350_v23, %v132_v62  ;;  %v352_v28 = vpop.f32.mrb[9].mxu0  ;;  %2861 = vst [vmem:[#allocation24_spill] sm:$0xff] %v2522_v15  ;;  %p2185_p7 = por %p2184_p6, %p2183_p5 }
 0x151   :  { %v2506_v31 = vadd.f32 %v352_v28, %v136_v1  ;;  %v354_v37 = vpop.f32.mrb[10].mxu0 }
 0x152   :  { %v2508_v53 = vadd.f32 %v354_v37, %v132_v62  ;;  %v356_v56 = vpop.f32.mrb[11].mxu0  ;;  %p2186_p8 = pnand %p2185_p7, %p2179_p4 }
 0x153   :  { %v2513_v4 = vadd.f32 %v356_v56, %v136_v1 }
 0x154   :  { %2857 = vst [vmem:[#allocation20_spill] sm:$0xff] %v2508_v53 }
 0x155   :  { %2859 = vst [vmem:[#allocation22_spill] sm:$0xff] %v2513_v4 }
 0x157   :  { %v360_v19 = vpop.f32.mrb[12].mxu0 }
 0x158   :  { %v2524_v21 = vadd.f32 %v360_v19, %v132_v62  ;;  %v362_v23 = vpop.f32.mrb[13].mxu0  ;;  %v331_v19 = vadd.f32 %v330_v61, %v132_v62 }
 0x159   :  { %v2526_v28 = vadd.f32 %v362_v23, %v136_v1  ;;  %v364_v37 = vpop.f32.mrb[14].mxu0 }
 0x15a   :  { %2862 = vst [vmem:[#allocation25_spill] sm:$0xff] %v2524_v21  ;;  %v2531_v56 = vadd.f32 %v364_v37, %v132_v62  ;;  %v366_v2 = vpop.f32.mrb[15].mxu0 }
 0x15b   :  { %2863 = vst [vmem:[#allocation26_spill] sm:$0xff] %v2526_v28  ;;  %v2533_v10 = vadd.f32 %v366_v2, %v136_v1 }
 0x15c   :  { %2864 = vst [vmem:[#allocation27_spill] sm:$0xff] %v2531_v56 }
 0x15d   :  { %2865 = vst [vmem:[#allocation28_spill] sm:$0xff] %v2533_v10 }
 0x15f   :  { %v677_v35 = vpop.f32.mrb[16].mxu0 }
 0x160   :  { %v678_v5 = vadd.f32 %v677_v35, %v2535_v0  ;;  %v679_v23 = vpop.f32.mrb[17].mxu0  ;;  %v2866_v35 = vsub.s32 2, %v2471_v57 }
 0x161   :  { %v680_v59 = vadd.f32 %v679_v23, %v2537_v13  ;;  %v681_v28 = vpop.f32.mrb[18].mxu0 }
 0x162   :  { %v724_v21 = vadd.f32 %v678_v5, %v331_v19  ;;  %v682_v15 = vpop.f32.mrb[19].mxu0  ;;  %v718_v10 = vpop.f32.mrb[8].mxu1  ;;  %v2543_v62 = vrot.slane %v490_v43, %v2866_v35 }
 0x163   :  { %v731_v37 = vadd.f32 %v680_v59, %v333_v12  ;;  %v1763_v58 = vpop.f32.mrb[9].mxu1  ;;  %v404_v12 = vadd.f32 %v403_v17, %v2485_v7  ;;  %v2867_v7 = vmov 0.0   ;;  %v2868_v17 = vmov 0  }
 0x164   :  { %v1621_v56 = vmul.f32 -1.442695, %v724_v21  ;;  %v721_v4 = vpop.f32.mrb[10].mxu1  ;;  %v719_v5 = vadd.f32 %v718_v10, %v2543_v62 }
 0x165   :  { %v1622_v2 = vmul.f32 -1.442695, %v731_v37  ;;  %v1764_v60 = vpop.f32.mrb[11].mxu1 }
 0x166   :  { %1986 = vpow2.f32 %v1621_v56 }
 0x167   :  { %1988 = vpow2.f32 %v1622_v2 }
 0x170   :  { %v1987_v53 = vpop.eup %1986 }
 0x171   :  { %v728_v61 = vadd.f32 1.0, %v1987_v53  ;;  %v1989_v63 = vpop.eup %1988 }
 0x172   :  { %v735_v1 = vadd.f32 1.0, %v1989_v63 }
 0x173   :  { %1990 = vrcp.f32 %v728_v61 }
 0x174   :  { %1992 = vrcp.f32 %v735_v1 }
 0x17d   :  { %v1991_v59 = vpop.eup %1990 }
 0x17e   :  { %v738_v15 = vmul.f32 %v1991_v59, %v719_v5  ;;  %v1993_v4 = vpop.eup %1992 }
 0x17f   :  { %v741_v28 = vsub.f32 1.0, %v1993_v4  ;;  %v743_v19 = vmul.f32 %v1993_v4, %v2415_v51 }
 0x180   :  { %v739_v21 = vadd.f32 %v738_v15, %v404_v12 }
 0x182   :  { %1994 = vtanh.f32 %v739_v21 }
 0x18c   :  { %v1995_v56 = vpop.eup %1994 }
 0x18d   :  { %v742_v53 = vmul.f32 %v1995_v56, %v741_v28 }
 0x18f   :  { %v2548_v57 = vadd.f32 %v743_v19, %v742_v53 }
 0x191   :  { %v745_v43 = vpack.c.bf16 %v2548_v57, %v2548_v57 }
 0x193   :  { %746 = vst [vmem:[#allocation12] sm:$0xf] %v745_v43  ;;  %786 = vmatmul.mubr.bf16.vlgmr.msra.gmra.mrb[20].mxu0 %v745_v43  ;;  %1782 = vmatmul.mubr.bf16.vlgmr.msra.gmra.mrb[12].mxu1 %v745_v43 }
 0x194   :  { %865 = vmatpush1.bf16.msra.mxu0 %v2346_v26  ;;  %1786 = vmatpush3.bf16.msra.mxu1 %v2364_v34 }
 0x195   :  { %866 = vmatprep.subr.bf16.mxu0 %v2349_v27  ;;  %1787 = vmatprep.subr.bf16.mxu1 %v2867_v7 }
 0x196   :  { %896 = vmatprep.mubr.bf16.mxu0 %v2868_v17  ;;  %1801 = vmatprep.mubr.msk.bf16.mxu1 %vm2242_vm0, %v2867_v7 }
 0x198   :  { %867 = vmatpush1.bf16.msra.mxu0 %v2352_v29  ;;  %1788 = vmatpush3.bf16.msra.mxu1 %v2375_v39 }
 0x199   :  { %868 = vmatprep.subr.bf16.mxu0 %v2356_v30  ;;  %1789 = vmatprep.subr.bf16.mxu1 %v2867_v7 }
 0x19c   :  { %869 = vmatpush1.bf16.msra.mxu0 %v2359_v32  ;;  %1790 = vmatpush3.bf16.msra.mxu1 %v2385_v42 }
 0x19d   :  { %870 = vmatprep.subr.bf16.mxu0 %v2362_v33  ;;  %1791 = vmatprep.subr.bf16.mxu1 %v2867_v7 }
 0x1a0   :  { %871 = vmatpush1.bf16.msra.mxu0 %v2368_v36  ;;  %1792 = vmatpush3.bf16.msra.mxu1 %v2396_v46 }
 0x1a1   :  { %872 = vmatprep.subr.bf16.mxu0 %v2372_v38  ;;  %1793 = vmatprep.subr.bf16.mxu1 %v2867_v7 }
 0x1a4   :  { %873 = vmatpush1.bf16.msra.mxu0 %v2379_v40  ;;  %1794 = vmatpush3.bf16.msra.mxu1 %v2408_v49 }
 0x1a5   :  { %874 = vmatprep.subr.bf16.mxu0 %v2382_v41  ;;  %1795 = vmatprep.subr.bf16.mxu1 %v2867_v7 }
 0x1a8   :  { %875 = vmatpush1.bf16.msra.mxu0 %v2389_v44  ;;  %1796 = vmatpush3.bf16.msra.mxu1 %v2419_v52 }
 0x1a9   :  { %876 = vmatprep.subr.bf16.mxu0 %v2393_v45  ;;  %1797 = vmatprep.subr.bf16.mxu1 %v2867_v7 }
 0x1ac   :  { %877 = vmatpush1.bf16.msra.mxu0 %v2402_v47  ;;  %1798 = vmatpush3.bf16.msra.mxu1 %v2427_v54 }
 0x1ad   :  { %878 = vmatprep.subr.bf16.mxu0 %v2405_v48  ;;  %1799 = vmatprep.subr.bf16.mxu1 %v2867_v7 }
 0x1b0   :  { %879 = vmatpush1.bf16.msra.mxu0 %v2412_v50  ;;  %1800 = vmatpush3.bf16.msra.mxu1 %v2434_v55 }
 0x1b1   :  { %975 = vmatprep.subr.bf16.mxu0 %v2344_v24  ;;  %1805 = vmatprep.subr.bf16.mxu1 %v2867_v7 }
 0x266   :  { %v787_v51 = vpop.f32.mrb[20].mxu0  ;;  %v828_v10 = vpop.f32.mrb[12].mxu1 }
 0x267   :  { %v788_v23 = vadd.f32 %v787_v51, %v2535_v0  ;;  %v789_v37 = vpop.f32.mrb[21].mxu0  ;;  %v1783_v2 = vpop.f32.mrb[13].mxu1  ;;  %v829_v56 = vadd.f32 %v828_v10, %v2543_v62 }
 0x268   :  { %v790_v58 = vadd.f32 %v789_v37, %v2537_v13  ;;  %v791_v60 = vpop.f32.mrb[22].mxu0  ;;  %v831_v61 = vpop.f32.mrb[14].mxu1 }
 0x269   :  { %v834_v35 = vadd.f32 %v788_v23, %v2478_v3  ;;  %v792_v63 = vpop.f32.mrb[23].mxu0  ;;  %v1784_v1 = vpop.f32.mrb[15].mxu1 }
 0x26a   :  { %v841_v5 = vadd.f32 %v790_v58, %v2481_v6 }
 0x26b   :  { %v1623_v59 = vmul.f32 -1.442695, %v834_v35 }
 0x26c   :  { %v1624_v12 = vmul.f32 -1.442695, %v841_v5 }
 0x26d   :  { %1996 = vpow2.f32 %v1623_v59 }
 0x26e   :  { %1998 = vpow2.f32 %v1624_v12 }
 0x277   :  { %v1997_v15 = vpop.eup %1996 }
 0x278   :  { %v838_v21 = vadd.f32 1.0, %v1997_v15  ;;  %v1999_v4 = vpop.eup %1998 }
 0x279   :  { %v845_v28 = vadd.f32 1.0, %v1999_v4 }
 0x27a   :  { %2000 = vrcp.f32 %v838_v21 }
 0x27b   :  { %2002 = vrcp.f32 %v845_v28 }
 0x284   :  { %v2001_v53 = vpop.eup %2000 }
 0x285   :  { %v848_v19 = vmul.f32 %v2001_v53, %v829_v56  ;;  %v2003_v43 = vpop.eup %2002 }
 0x286   :  { %v851_v51 = vsub.f32 1.0, %v2003_v43  ;;  %v853_v37 = vmul.f32 %v2003_v43, %v2548_v57 }
 0x287   :  { %v849_v3 = vadd.f32 %v848_v19, %v2502_v22 }
 0x289   :  { %2004 = vtanh.f32 %v849_v3 }
 0x293   :  { %v2005_v6 = vpop.eup %2004 }
 0x294   :  { %v852_v23 = vmul.f32 %v2005_v6, %v851_v51 }
 0x296   :  { %v2594_v2 = vadd.f32 %v853_v37, %v852_v23 }
 0x298   :  { %v855_v58 = vpack.c.bf16 %v2594_v2, %v2594_v2 }
 0x29a   :  { %857 = vst [vmem:[#allocation12 + $0x4] sm:$0xf] %v855_v58  ;;  %897 = vmatmul.mubr.bf16.vlgmr.msra.gmra.mrb[24].mxu0 %v855_v58  ;;  %1802 = vmatmul.mubr.bf16.vlgmr.msra.gmra.mrb[16].mxu1 %v855_v58 }
 0x29b   :  { %976 = vmatpush1.bf16.msra.mxu0 %v2346_v26  ;;  %1806 = vmatpush3.bf16.msra.mxu1 %v2364_v34 }
 0x29c   :  { %977 = vmatprep.subr.bf16.mxu0 %v2349_v27  ;;  %1807 = vmatprep.subr.bf16.mxu1 %v2867_v7 }
 0x29d   :  { %1007 = vmatprep.mubr.bf16.mxu0 %v2868_v17  ;;  %1821 = vmatprep.mubr.msk.bf16.mxu1 %vm2242_vm0, %v2867_v7 }
 0x29f   :  { %978 = vmatpush1.bf16.msra.mxu0 %v2352_v29  ;;  %1808 = vmatpush3.bf16.msra.mxu1 %v2375_v39 }
 0x2a0   :  { %979 = vmatprep.subr.bf16.mxu0 %v2356_v30  ;;  %1809 = vmatprep.subr.bf16.mxu1 %v2867_v7 }
 0x2a3   :  { %980 = vmatpush1.bf16.msra.mxu0 %v2359_v32  ;;  %1810 = vmatpush3.bf16.msra.mxu1 %v2385_v42 }
 0x2a4   :  { %981 = vmatprep.subr.bf16.mxu0 %v2362_v33  ;;  %1811 = vmatprep.subr.bf16.mxu1 %v2867_v7 }
 0x2a7   :  { %982 = vmatpush1.bf16.msra.mxu0 %v2368_v36  ;;  %1812 = vmatpush3.bf16.msra.mxu1 %v2396_v46 }
 0x2a8   :  { %983 = vmatprep.subr.bf16.mxu0 %v2372_v38  ;;  %1813 = vmatprep.subr.bf16.mxu1 %v2867_v7 }
 0x2ab   :  { %984 = vmatpush1.bf16.msra.mxu0 %v2379_v40  ;;  %1814 = vmatpush3.bf16.msra.mxu1 %v2408_v49 }
 0x2ac   :  { %985 = vmatprep.subr.bf16.mxu0 %v2382_v41  ;;  %1815 = vmatprep.subr.bf16.mxu1 %v2867_v7 }
 0x2af   :  { %986 = vmatpush1.bf16.msra.mxu0 %v2389_v44  ;;  %1816 = vmatpush3.bf16.msra.mxu1 %v2419_v52 }
 0x2b0   :  { %987 = vmatprep.subr.bf16.mxu0 %v2393_v45  ;;  %1817 = vmatprep.subr.bf16.mxu1 %v2867_v7 }
 0x2b3   :  { %988 = vmatpush1.bf16.msra.mxu0 %v2402_v47  ;;  %1818 = vmatpush3.bf16.msra.mxu1 %v2427_v54 }
 0x2b4   :  { %989 = vmatprep.subr.bf16.mxu0 %v2405_v48  ;;  %1819 = vmatprep.subr.bf16.mxu1 %v2867_v7 }
 0x2b7   :  { %990 = vmatpush1.bf16.msra.mxu0 %v2412_v50  ;;  %1820 = vmatpush3.bf16.msra.mxu1 %v2434_v55 }
 0x2b8   :  { %1086 = vmatprep.subr.bf16.mxu0 %v2344_v24  ;;  %1825 = vmatprep.subr.bf16.mxu1 %v2867_v7 }
 0x36d   :  { %v898_v22 = vpop.f32.mrb[24].mxu0  ;;  %v939_v57 = vpop.f32.mrb[16].mxu1 }
 0x36e   :  { %v899_v10 = vadd.f32 %v898_v22, %v2535_v0  ;;  %v900_v60 = vpop.f32.mrb[25].mxu0  ;;  %v1803_v61 = vpop.f32.mrb[17].mxu1  ;;  %v940_v3 = vadd.f32 %v939_v57, %v2543_v62 }
 0x36f   :  { %v901_v35 = vadd.f32 %v900_v60, %v2537_v13  ;;  %v902_v63 = vpop.f32.mrb[26].mxu0  ;;  %v942_v1 = vpop.f32.mrb[18].mxu1 }
 0x370   :  { %v945_v5 = vadd.f32 %v899_v10, %v2487_v9  ;;  %v903_v59 = vpop.f32.mrb[27].mxu0  ;;  %v1804_v12 = vpop.f32.mrb[19].mxu1 }
 0x371   :  { %v952_v15 = vadd.f32 %v901_v35, %v2489_v11 }
 0x372   :  { %v1625_v21 = vmul.f32 -1.442695, %v945_v5 }
 0x373   :  { %v1626_v4 = vmul.f32 -1.442695, %v952_v15 }
 0x374   :  { %2006 = vpow2.f32 %v1625_v21 }
 0x375   :  { %2008 = vpow2.f32 %v1626_v4 }
 0x37e   :  { %v2007_v28 = vpop.eup %2006 }
 0x37f   :  { %v949_v56 = vadd.f32 1.0, %v2007_v28  ;;  %v2009_v53 = vpop.eup %2008 }
 0x380   :  { %v956_v19 = vadd.f32 1.0, %v2009_v53 }
 0x381   :  { %2010 = vrcp.f32 %v949_v56 }
 0x382   :  { %2012 = vrcp.f32 %v956_v19 }
 0x38b   :  { %v2011_v43 = vpop.eup %2010 }
 0x38c   :  { %v959_v51 = vmul.f32 %v2011_v43, %v940_v3  ;;  %v2013_v6 = vpop.eup %2012 }
 0x38d   :  { %v962_v23 = vsub.f32 1.0, %v2013_v6  ;;  %v964_v58 = vmul.f32 %v2013_v6, %v2594_v2 }
 0x38e   :  { %v960_v9 = vadd.f32 %v959_v51, %v2494_v16 }
 0x390   :  { %2014 = vtanh.f32 %v960_v9 }
 0x39a   :  { %v2015_v11 = vpop.eup %2014 }
 0x39b   :  { %v963_v37 = vmul.f32 %v2015_v11, %v962_v23 }
 0x39d   :  { %v2640_v22 = vadd.f32 %v964_v58, %v963_v37 }
 0x39f   :  { %v966_v10 = vpack.c.bf16 %v2640_v22, %v2640_v22 }
 0x3a1   :  { %968 = vst [vmem:[#allocation12 + $0x8] sm:$0xf] %v966_v10  ;;  %1008 = vmatmul.mubr.bf16.vlgmr.msra.gmra.mrb[28].mxu0 %v966_v10  ;;  %1822 = vmatmul.mubr.bf16.vlgmr.msra.gmra.mrb[20].mxu1 %v966_v10 }
 0x3a2   :  { %1087 = vmatpush1.bf16.msra.mxu0 %v2346_v26  ;;  %1826 = vmatpush3.bf16.msra.mxu1 %v2364_v34 }
 0x3a3   :  { %1088 = vmatprep.subr.bf16.mxu0 %v2349_v27  ;;  %1827 = vmatprep.subr.bf16.mxu1 %v2867_v7 }
 0x3a4   :  { %1118 = vmatprep.mubr.bf16.mxu0 %v2868_v17  ;;  %1841 = vmatprep.mubr.msk.bf16.mxu1 %vm2242_vm0, %v2867_v7 }
 0x3a6   :  { %1089 = vmatpush1.bf16.msra.mxu0 %v2352_v29  ;;  %1828 = vmatpush3.bf16.msra.mxu1 %v2375_v39 }
 0x3a7   :  { %1090 = vmatprep.subr.bf16.mxu0 %v2356_v30  ;;  %1829 = vmatprep.subr.bf16.mxu1 %v2867_v7 }
 0x3aa   :  { %1091 = vmatpush1.bf16.msra.mxu0 %v2359_v32  ;;  %1830 = vmatpush3.bf16.msra.mxu1 %v2385_v42 }
 0x3ab   :  { %1092 = vmatprep.subr.bf16.mxu0 %v2362_v33  ;;  %1831 = vmatprep.subr.bf16.mxu1 %v2867_v7 }
 0x3ae   :  { %1093 = vmatpush1.bf16.msra.mxu0 %v2368_v36  ;;  %1832 = vmatpush3.bf16.msra.mxu1 %v2396_v46 }
 0x3af   :  { %1094 = vmatprep.subr.bf16.mxu0 %v2372_v38  ;;  %1833 = vmatprep.subr.bf16.mxu1 %v2867_v7 }
 0x3b2   :  { %1095 = vmatpush1.bf16.msra.mxu0 %v2379_v40  ;;  %1834 = vmatpush3.bf16.msra.mxu1 %v2408_v49 }
 0x3b3   :  { %1096 = vmatprep.subr.bf16.mxu0 %v2382_v41  ;;  %1835 = vmatprep.subr.bf16.mxu1 %v2867_v7 }
 0x3b6   :  { %1097 = vmatpush1.bf16.msra.mxu0 %v2389_v44  ;;  %1836 = vmatpush3.bf16.msra.mxu1 %v2419_v52 }
 0x3b7   :  { %1098 = vmatprep.subr.bf16.mxu0 %v2393_v45  ;;  %1837 = vmatprep.subr.bf16.mxu1 %v2867_v7 }
 0x3ba   :  { %1099 = vmatpush1.bf16.msra.mxu0 %v2402_v47  ;;  %1838 = vmatpush3.bf16.msra.mxu1 %v2427_v54 }
 0x3bb   :  { %1100 = vmatprep.subr.bf16.mxu0 %v2405_v48  ;;  %1839 = vmatprep.subr.bf16.mxu1 %v2867_v7 }
 0x3be   :  { %1101 = vmatpush1.bf16.msra.mxu0 %v2412_v50  ;;  %1840 = vmatpush3.bf16.msra.mxu1 %v2434_v55 }
 0x3bf   :  { %1197 = vmatprep.subr.bf16.mxu0 %v2344_v24  ;;  %1845 = vmatprep.subr.bf16.mxu1 %v2867_v7 }
 0x474   :  { %v1009_v16 = vpop.f32.mrb[28].mxu0  ;;  %v1050_v2 = vpop.f32.mrb[20].mxu1 }
 0x475   :  { %v1010_v57 = vadd.f32 %v1009_v16, %v2535_v0  ;;  %v1011_v60 = vpop.f32.mrb[29].mxu0  ;;  %v1823_v61 = vpop.f32.mrb[21].mxu1  ;;  %v1051_v3 = vadd.f32 %v1050_v2, %v2543_v62 }
 0x476   :  { %v1012_v35 = vadd.f32 %v1011_v60, %v2537_v13  ;;  %v1013_v63 = vpop.f32.mrb[30].mxu0  ;;  %v1053_v1 = vpop.f32.mrb[22].mxu1 }
 0x477   :  { %v1056_v5 = vadd.f32 %v1010_v57, %v2491_v14  ;;  %v1014_v59 = vpop.f32.mrb[31].mxu0  ;;  %v1824_v12 = vpop.f32.mrb[23].mxu1 }
 0x478   :  { %v1063_v15 = vadd.f32 %v1012_v35, %v2496_v18 }
 0x479   :  { %v1627_v21 = vmul.f32 -1.442695, %v1056_v5 }
 0x47a   :  { %v1628_v4 = vmul.f32 -1.442695, %v1063_v15 }
 0x47b   :  { %2016 = vpow2.f32 %v1627_v21 }
 0x47c   :  { %2018 = vpow2.f32 %v1628_v4 }
 0x485   :  { %v2017_v28 = vpop.eup %2016 }
 0x486   :  { %v1060_v56 = vadd.f32 1.0, %v2017_v28  ;;  %v2019_v53 = vpop.eup %2018 }
 0x487   :  { %v1067_v19 = vadd.f32 1.0, %v2019_v53 }
 0x488   :  { %2020 = vrcp.f32 %v1060_v56 }
 0x489   :  { %2022 = vrcp.f32 %v1067_v19 }
 0x492   :  { %v2021_v43 = vpop.eup %2020 }
 0x493   :  { %v1070_v51 = vmul.f32 %v2021_v43, %v1051_v3  ;;  %v2023_v9 = vpop.eup %2022 }
 0x494   :  { %v1073_v6 = vsub.f32 1.0, %v2023_v9  ;;  %v1075_v11 = vmul.f32 %v2023_v9, %v2640_v22 }
 0x495   :  { %v1071_v14 = vadd.f32 %v1070_v51, %v2499_v20 }
 0x497   :  { %2024 = vtanh.f32 %v1071_v14  ;;  %v2736_v14 = vld [vmem:[#allocation10] ss:$12 sps:$4 sm:$0xff]  }
 0x4a1   :  { %v2025_v18 = vpop.eup %2024 }
 0x4a2   :  { %v1074_v23 = vmul.f32 %v2025_v18, %v1073_v6 }
 0x4a4   :  { %v2686_v37 = vadd.f32 %v1075_v11, %v1074_v23  ;;  %v2871_v23 = vld [vmem:[#allocation24_spill] sm:$0xff] }
 0x4a6   :  { %v1077_v58 = vpack.c.bf16 %v2686_v37, %v2686_v37 }
 0x4a8   :  { %1079 = vst [vmem:[#allocation12 + $0xc] sm:$0xf] %v1077_v58  ;;  %1119 = vmatmul.mubr.bf16.vlgmr.msra.gmra.mrb[32].mxu0 %v1077_v58  ;;  %1842 = vmatmul.mubr.bf16.vlgmr.msra.gmra.mrb[24].mxu1 %v1077_v58 }
 0x4a9   :  { %1198 = vmatpush1.bf16.msra.mxu0 %v2346_v26  ;;  %1846 = vmatpush3.bf16.msra.mxu1 %v2364_v34 }
 0x4aa   :  { %1199 = vmatprep.subr.bf16.mxu0 %v2349_v27  ;;  %1847 = vmatprep.subr.bf16.mxu1 %v2867_v7 }
 0x4ab   :  { %1229 = vmatprep.mubr.bf16.mxu0 %v2868_v17  ;;  %1861 = vmatprep.mubr.msk.bf16.mxu1 %vm2242_vm0, %v2867_v7 }
 0x4ad   :  { %1200 = vmatpush1.bf16.msra.mxu0 %v2352_v29  ;;  %1848 = vmatpush3.bf16.msra.mxu1 %v2375_v39 }
 0x4ae   :  { %1201 = vmatprep.subr.bf16.mxu0 %v2356_v30  ;;  %1849 = vmatprep.subr.bf16.mxu1 %v2867_v7 }
 0x4b1   :  { %1202 = vmatpush1.bf16.msra.mxu0 %v2359_v32  ;;  %1850 = vmatpush3.bf16.msra.mxu1 %v2385_v42 }
 0x4b2   :  { %1203 = vmatprep.subr.bf16.mxu0 %v2362_v33  ;;  %1851 = vmatprep.subr.bf16.mxu1 %v2867_v7 }
 0x4b5   :  { %1204 = vmatpush1.bf16.msra.mxu0 %v2368_v36  ;;  %1852 = vmatpush3.bf16.msra.mxu1 %v2396_v46 }
 0x4b6   :  { %1205 = vmatprep.subr.bf16.mxu0 %v2372_v38  ;;  %1853 = vmatprep.subr.bf16.mxu1 %v2867_v7 }
 0x4b9   :  { %1206 = vmatpush1.bf16.msra.mxu0 %v2379_v40  ;;  %1854 = vmatpush3.bf16.msra.mxu1 %v2408_v49 }
 0x4ba   :  { %1207 = vmatprep.subr.bf16.mxu0 %v2382_v41  ;;  %1855 = vmatprep.subr.bf16.mxu1 %v2867_v7 }
 0x4bd   :  { %1208 = vmatpush1.bf16.msra.mxu0 %v2389_v44  ;;  %1856 = vmatpush3.bf16.msra.mxu1 %v2419_v52 }
 0x4be   :  { %1209 = vmatprep.subr.bf16.mxu0 %v2393_v45  ;;  %1857 = vmatprep.subr.bf16.mxu1 %v2867_v7 }
 0x4c1   :  { %1210 = vmatpush1.bf16.msra.mxu0 %v2402_v47  ;;  %1858 = vmatpush3.bf16.msra.mxu1 %v2427_v54 }
 0x4c2   :  { %1211 = vmatprep.subr.bf16.mxu0 %v2405_v48  ;;  %1859 = vmatprep.subr.bf16.mxu1 %v2867_v7 }
 0x4c5   :  { %1212 = vmatpush1.bf16.msra.mxu0 %v2412_v50  ;;  %1860 = vmatpush3.bf16.msra.mxu1 %v2434_v55 }
 0x4c6   :  { %1308 = vmatprep.subr.bf16.mxu0 %v2344_v24  ;;  %1865 = vmatprep.subr.bf16.mxu1 %v2867_v7 }
 0x57b   :  { %v1120_v26 = vpop.f32.mrb[32].mxu0  ;;  %v1161_v27 = vpop.f32.mrb[24].mxu1 }
 0x57c   :  { %v1121_v20 = vadd.f32 %v1120_v26, %v2535_v0  ;;  %v1122_v22 = vpop.f32.mrb[33].mxu0  ;;  %v1843_v10 = vpop.f32.mrb[25].mxu1  ;;  %v1162_v21 = vadd.f32 %v1161_v27, %v2543_v62 }
 0x57d   :  { %v1123_v16 = vadd.f32 %v1122_v22, %v2537_v13  ;;  %v1124_v2 = vpop.f32.mrb[34].mxu0  ;;  %v1164_v57 = vpop.f32.mrb[26].mxu1 }
 0x57e   :  { %v1167_v60 = vadd.f32 %v1121_v20, %v2504_v25  ;;  %v1125_v61 = vpop.f32.mrb[35].mxu0  ;;  %v1844_v35 = vpop.f32.mrb[27].mxu1  ;;  %v2070_v2 = vld [vmem:[#allocation10 + $0x18] ss:$12 sps:$4 sm:$0xff]   ;;  %v2071_v57 = vld [vmem:[#allocation10 + $0x20] ss:$12 sps:$4 sm:$0xff]  }
 0x57f   :  { %v1174_v63 = vadd.f32 %v1123_v16, %v2506_v31  ;;  %v2069_v16 = vld [vmem:[#allocation10 + $0x8] ss:$12 sps:$4 sm:$0xff]   ;;  %v2073_v61 = vld [vmem:[#allocation10 + $0x30] ss:$12 sps:$4 sm:$0xff]   ;;  %v2074_v35 = vld [vmem:[#allocation10 + $0x38] ss:$12 sps:$4 sm:$0xff]  }
 0x580   :  { %v1629_v1 = vmul.f32 -1.442695, %v1167_v60  ;;  %v2072_v60 = vld [vmem:[#allocation10 + $0x34] ss:$12 sps:$4 sm:$0xff]  }
 0x581   :  { %v1630_v24 = vmul.f32 -1.442695, %v1174_v63  ;;  %v2075_v63 = vld [vmem:[#allocation10 + $0x4c] ss:$12 sps:$4 sm:$0xff]  }
 0x582   :  { %2026 = vpow2.f32 %v1629_v1  ;;  %v2077_v1 = vld [vmem:[#allocation10 + $0x50] ss:$12 sps:$4 sm:$0xff]  }
 0x583   :  { %2028 = vpow2.f32 %v1630_v24  ;;  %v2078_v24 = vld [vmem:[#allocation10 + $0x64] ss:$12 sps:$4 sm:$0xff]  }
 0x58c   :  { %v2027_v5 = vpop.eup %2026 }
 0x58d   :  { %v1171_v59 = vadd.f32 1.0, %v2027_v5  ;;  %v2029_v12 = vpop.eup %2028  ;;  %v2079_v5 = vld [vmem:[#allocation10 + $0x60] ss:$12 sps:$4 sm:$0xff]  }
 0x58e   :  { %v1178_v15 = vadd.f32 1.0, %v2029_v12  ;;  %v2081_v12 = vld [vmem:[#allocation10 + $0x7c] ss:$12 sps:$4 sm:$0xff]  }
 0x58f   :  { %2030 = vrcp.f32 %v1171_v59  ;;  %v2080_v59 = vld [vmem:[#allocation10 + $0x68] ss:$12 sps:$4 sm:$0xff]  }
 0x590   :  { %2032 = vrcp.f32 %v1178_v15  ;;  %v2082_v15 = vld [vmem:[#allocation10 + $0x78] ss:$12 sps:$4 sm:$0xff]  }
 0x599   :  { %v2031_v4 = vpop.eup %2030 }
 0x59a   :  { %v1181_v28 = vmul.f32 %v2031_v4, %v1162_v21  ;;  %v2033_v56 = vpop.eup %2032  ;;  %v2083_v21 = vld [vmem:[#allocation10 + $0x80] ss:$12 sps:$4 sm:$0xff]  }
 0x59b   :  { %v1184_v53 = vsub.f32 1.0, %v2033_v56  ;;  %v1186_v3 = vmul.f32 %v2033_v56, %v2686_v37  ;;  %v2084_v4 = vld [vmem:[#allocation10 + $0x94] ss:$12 sps:$4 sm:$0xff]   ;;  %v2087_v56 = vld [vmem:[#allocation10 + $0xac] ss:$12 sps:$4 sm:$0xff]  }
 0x59c   :  { %v1182_v25 = vadd.f32 %v1181_v28, %v2516_v8  ;;  %v2740_v8 = vld [vmem:[#allocation10 + $0x1c] ss:$12 sps:$4 sm:$0xff]  }
 0x59d   :  { %v2085_v28 = vld [vmem:[#allocation10 + $0x90] ss:$12 sps:$4 sm:$0xff]  }
 0x59e   :  { %2034 = vtanh.f32 %v1182_v25  ;;  %v2086_v25 = vld [vmem:[#allocation10 + $0x98] ss:$12 sps:$4 sm:$0xff]  }
 0x5a8   :  { %v2035_v31 = vpop.eup %2034 }
 0x5a9   :  { %v1185_v19 = vmul.f32 %v2035_v31, %v1184_v53  ;;  %v2088_v53 = vld [vmem:[#allocation10 + $0xa8] ss:$12 sps:$4 sm:$0xff]   ;;  %v2089_v31 = vld [vmem:[#allocation10 + $0xb0] ss:$12 sps:$4 sm:$0xff]  }
 0x5ab   :  { %v2732_v43 = vadd.f32 %v1186_v3, %v1185_v19 }
 0x5ad   :  { %v1188_v51 = vpack.c.bf16 %v2732_v43, %v2732_v43 }
 0x5af   :  { %1190 = vst [vmem:[#allocation12 + $0x10] sm:$0xf] %v1188_v51  ;;  %1230 = vmatmul.mubr.bf16.vlgmr.msra.gmra.mrb[36].mxu0 %v1188_v51  ;;  %1862 = vmatmul.mubr.bf16.vlgmr.msra.gmra.mrb[28].mxu1 %v1188_v51 }
 0x5b0   :  { %1309 = vmatpush1.bf16.msra.mxu0 %v2736_v14  ;;  %1866 = vmatpush3.bf16.msra.mxu1 %v2364_v34 }
 0x5b1   :  { %1310 = vmatprep.subr.bf16.mxu0 %v2740_v8  ;;  %1867 = vmatprep.subr.bf16.mxu1 %v2867_v7 }
 0x5b2   :  { %1340 = vmatprep.mubr.bf16.mxu0 %v2868_v17  ;;  %1881 = vmatprep.mubr.msk.bf16.mxu1 %vm2242_vm0, %v2867_v7 }
 0x5b4   :  { %1311 = vmatpush1.bf16.msra.mxu0 %v2352_v29  ;;  %1868 = vmatpush3.bf16.msra.mxu1 %v2375_v39  ;;  %v2068_v29 = vld [vmem:[#allocation10 + $0x4] ss:$12 sps:$4 sm:$0xff]  }
 0x5b5   :  { %1312 = vmatprep.subr.bf16.mxu0 %v2356_v30  ;;  %1869 = vmatprep.subr.bf16.mxu1 %v2867_v7 }
 0x5b8   :  { %1313 = vmatpush1.bf16.msra.mxu0 %v2359_v32  ;;  %1870 = vmatpush3.bf16.msra.mxu1 %v2385_v42 }
 0x5b9   :  { %1314 = vmatprep.subr.bf16.mxu0 %v2362_v33  ;;  %1871 = vmatprep.subr.bf16.mxu1 %v2867_v7 }
 0x5bc   :  { %1315 = vmatpush1.bf16.msra.mxu0 %v2368_v36  ;;  %1872 = vmatpush3.bf16.msra.mxu1 %v2396_v46  ;;  %v2870_v46 = vld [vmem:[#allocation22_spill] sm:$0xff] }
 0x5bd   :  { %1316 = vmatprep.subr.bf16.mxu0 %v2372_v38  ;;  %1873 = vmatprep.subr.bf16.mxu1 %v2867_v7 }
 0x5c0   :  { %1317 = vmatpush1.bf16.msra.mxu0 %v2379_v40  ;;  %1874 = vmatpush3.bf16.msra.mxu1 %v2408_v49 }
 0x5c1   :  { %1318 = vmatprep.subr.bf16.mxu0 %v2382_v41  ;;  %1875 = vmatprep.subr.bf16.mxu1 %v2867_v7  ;;  %v2869_v41 = vld [vmem:[#allocation20_spill] sm:$0xff] }
 0x5c4   :  { %1319 = vmatpush1.bf16.msra.mxu0 %v2389_v44  ;;  %1876 = vmatpush3.bf16.msra.mxu1 %v2419_v52 }
 0x5c5   :  { %1320 = vmatprep.subr.bf16.mxu0 %v2393_v45  ;;  %1877 = vmatprep.subr.bf16.mxu1 %v2867_v7 }
 0x5c8   :  { %1321 = vmatpush1.bf16.msra.mxu0 %v2402_v47  ;;  %1878 = vmatpush3.bf16.msra.mxu1 %v2427_v54 }
 0x5c9   :  { %1322 = vmatprep.subr.bf16.mxu0 %v2405_v48  ;;  %1879 = vmatprep.subr.bf16.mxu1 %v2867_v7 }
 0x5cc   :  { %1323 = vmatpush1.bf16.msra.mxu0 %v2412_v50  ;;  %1880 = vmatpush3.bf16.msra.mxu1 %v2434_v55 }
 0x5cd   :  { %1419 = vmatprep.subr.bf16.mxu0 %v2068_v29  ;;  %1885 = vmatprep.subr.bf16.mxu1 %v2867_v7 }
 0x682   :  { %v1231_v30 = vpop.f32.mrb[36].mxu0  ;;  %v1272_v32 = vpop.f32.mrb[28].mxu1 }
 0x683   :  { %v1232_v33 = vadd.f32 %v1231_v30, %v2535_v0  ;;  %v1233_v34 = vpop.f32.mrb[37].mxu0  ;;  %v1863_v36 = vpop.f32.mrb[29].mxu1  ;;  %v1273_v9 = vadd.f32 %v1272_v32, %v2543_v62  ;;  %v2872_v32 = vld [vmem:[#allocation25_spill] sm:$0xff] }
 0x684   :  { %v1234_v38 = vadd.f32 %v1233_v34, %v2537_v13  ;;  %v1235_v39 = vpop.f32.mrb[38].mxu0  ;;  %v1275_v40 = vpop.f32.mrb[30].mxu1 }
 0x685   :  { %v1278_v42 = vadd.f32 %v1232_v33, %v2869_v41  ;;  %v1236_v44 = vpop.f32.mrb[39].mxu0  ;;  %v1864_v45 = vpop.f32.mrb[31].mxu1 }
 0x686   :  { %v1285_v47 = vadd.f32 %v1234_v38, %v2870_v46  ;;  %v2873_v38 = vld [vmem:[#allocation26_spill] sm:$0xff] }
 0x687   :  { %v1631_v48 = vmul.f32 -1.442695, %v1278_v42 }
 0x688   :  { %v1632_v49 = vmul.f32 -1.442695, %v1285_v47 }
 0x689   :  { %2036 = vpow2.f32 %v1631_v48 }
 0x68a   :  { %2038 = vpow2.f32 %v1632_v49  ;;  %v2874_v49 = vld [vmem:[#allocation21_spill] sm:$0xff] }
 0x693   :  { %v2037_v50 = vpop.eup %2036 }
 0x694   :  { %v1282_v52 = vadd.f32 1.0, %v2037_v50  ;;  %v2039_v54 = vpop.eup %2038 }
 0x695   :  { %v1289_v55 = vadd.f32 1.0, %v2039_v54 }
 0x696   :  { %2040 = vrcp.f32 %v1282_v52 }
 0x697   :  { %2042 = vrcp.f32 %v1289_v55 }
 0x6a0   :  { %v2041_v6 = vpop.eup %2040 }
 0x6a1   :  { %v1292_v18 = vmul.f32 %v2041_v6, %v1273_v9  ;;  %v2043_v37 = vpop.eup %2042 }
 0x6a2   :  { %v1295_v58 = vsub.f32 1.0, %v2043_v37  ;;  %v1297_v20 = vmul.f32 %v2043_v37, %v2732_v43 }
 0x6a3   :  { %v1293_v11 = vadd.f32 %v1292_v18, %v2871_v23 }
 0x6a5   :  { %2044 = vtanh.f32 %v1293_v11 }
 0x6af   :  { %v2045_v26 = vpop.eup %2044 }
 0x6b0   :  { %v1296_v27 = vmul.f32 %v2045_v26, %v1295_v58 }
 0x6b2   :  { %v2781_v22 = vadd.f32 %v1297_v20, %v1296_v27 }
 0x6b4   :  { %v1299_v10 = vpack.c.bf16 %v2781_v22, %v2781_v22 }
 0x6b6   :  { %1301 = vst [vmem:[#allocation12 + $0x14] sm:$0xf] %v1299_v10  ;;  %1341 = vmatmul.mubr.bf16.vlgmr.msra.gmra.mrb[40].mxu0 %v1299_v10  ;;  %1882 = vmatmul.mubr.bf16.vlgmr.msra.gmra.mrb[32].mxu1 %v1299_v10 }
 0x6b7   :  { %1420 = vmatpush1.bf16.msra.mxu0 %v2736_v14  ;;  %1886 = vmatpush3.bf16.msra.mxu1 %v2069_v16 }
 0x6b8   :  { %1421 = vmatprep.subr.bf16.mxu0 %v2740_v8  ;;  %1887 = vmatprep.subr.bf16.mxu1 %v2867_v7 }
 0x6b9   :  { %1451 = vmatprep.mubr.bf16.mxu0 %v2868_v17  ;;  %1901 = vmatprep.mubr.msk.bf16.mxu1 %vm2242_vm0, %v2867_v7  ;;  %v2076_v17 = vld [vmem:[#allocation10 + $0x48] ss:$12 sps:$4 sm:$0xff]  }
 0x6bb   :  { %1422 = vmatpush1.bf16.msra.mxu0 %v2070_v2  ;;  %1888 = vmatpush3.bf16.msra.mxu1 %v2071_v57  ;;  %v2875_v2 = vld [vmem:[#allocation27_spill] sm:$0xff] }
 0x6bc   :  { %1423 = vmatprep.subr.bf16.mxu0 %v2072_v60  ;;  %1889 = vmatprep.subr.bf16.mxu1 %v2867_v7 }
 0x6bf   :  { %1424 = vmatpush1.bf16.msra.mxu0 %v2073_v61  ;;  %1890 = vmatpush3.bf16.msra.mxu1 %v2074_v35 }
 0x6c0   :  { %1425 = vmatprep.subr.bf16.mxu0 %v2075_v63  ;;  %1891 = vmatprep.subr.bf16.mxu1 %v2867_v7 }
 0x6c3   :  { %1426 = vmatpush1.bf16.msra.mxu0 %v2076_v17  ;;  %1892 = vmatpush3.bf16.msra.mxu1 %v2077_v1 }
 0x6c4   :  { %1427 = vmatprep.subr.bf16.mxu0 %v2078_v24  ;;  %1893 = vmatprep.subr.bf16.mxu1 %v2867_v7 }
 0x6c7   :  { %1428 = vmatpush1.bf16.msra.mxu0 %v2079_v5  ;;  %1894 = vmatpush3.bf16.msra.mxu1 %v2080_v59 }
 0x6c8   :  { %1429 = vmatprep.subr.bf16.mxu0 %v2081_v12  ;;  %1895 = vmatprep.subr.bf16.mxu1 %v2867_v7 }
 0x6cb   :  { %1430 = vmatpush1.bf16.msra.mxu0 %v2082_v15  ;;  %1896 = vmatpush3.bf16.msra.mxu1 %v2083_v21  ;;  %v2877_v15 = vld [vmem:[#allocation23_spill] sm:$0xff] }
 0x6cc   :  { %1431 = vmatprep.subr.bf16.mxu0 %v2084_v4  ;;  %1897 = vmatprep.subr.bf16.mxu1 %v2867_v7 }
 0x6cf   :  { %1432 = vmatpush1.bf16.msra.mxu0 %v2085_v28  ;;  %1898 = vmatpush3.bf16.msra.mxu1 %v2086_v25 }
 0x6d0   :  { %1433 = vmatprep.subr.bf16.mxu0 %v2087_v56  ;;  %1899 = vmatprep.subr.bf16.mxu1 %v2867_v7 }
 0x6d3   :  { %1434 = vmatpush1.bf16.msra.mxu0 %v2088_v53  ;;  %1900 = vmatpush3.bf16.msra.mxu1 %v2089_v31 }
 0x789   :  { %v1342_v19 = vpop.f32.mrb[40].mxu0  ;;  %v1383_v3 = vpop.f32.mrb[32].mxu1 }
 0x78a   :  { %v1343_v43 = vadd.f32 %v1342_v19, %v2535_v0  ;;  %v1344_v51 = vpop.f32.mrb[41].mxu0  ;;  %v1883_v14 = vpop.f32.mrb[33].mxu1  ;;  %v1384_v46 = vadd.f32 %v1383_v3, %v2543_v62 }
 0x78b   :  { %v1345_v8 = vadd.f32 %v1344_v51, %v2537_v13  ;;  %v1346_v29 = vpop.f32.mrb[42].mxu0  ;;  %v1386_v30 = vpop.f32.mrb[34].mxu1 }
 0x78c   :  { %v1389_v33 = vadd.f32 %v1343_v43, %v2872_v32  ;;  %v1347_v34 = vpop.f32.mrb[43].mxu0  ;;  %v1884_v36 = vpop.f32.mrb[35].mxu1 }
 0x78d   :  { %v1396_v7 = vadd.f32 %v1345_v8, %v2873_v38 }
 0x78e   :  { %v1633_v39 = vmul.f32 -1.442695, %v1389_v33 }
 0x78f   :  { %v1634_v40 = vmul.f32 -1.442695, %v1396_v7 }
 0x790   :  { %2046 = vpow2.f32 %v1633_v39 }
 0x791   :  { %2048 = vpow2.f32 %v1634_v40 }
 0x79a   :  { %v2047_v41 = vpop.eup %2046 }
 0x79b   :  { %v1393_v42 = vadd.f32 1.0, %v2047_v41  ;;  %v2049_v44 = vpop.eup %2048 }
 0x79c   :  { %v1400_v45 = vadd.f32 1.0, %v2049_v44 }
 0x79d   :  { %2050 = vrcp.f32 %v1393_v42 }
 0x79e   :  { %2052 = vrcp.f32 %v1400_v45 }
 0x7a7   :  { %v2051_v47 = vpop.eup %2050 }
 0x7a8   :  { %v1403_v48 = vmul.f32 %v2051_v47, %v1384_v46  ;;  %v2053_v52 = vpop.eup %2052 }
 0x7a9   :  { %v1406_v54 = vsub.f32 1.0, %v2053_v52  ;;  %v1408_v6 = vmul.f32 %v2053_v52, %v2781_v22  ;;  %v2876_v22 = vld [vmem:[#allocation28_spill] sm:$0xff] }
 0x7aa   :  { %v1404_v50 = vadd.f32 %v1403_v48, %v2874_v49 }
 0x7ac   :  { %2054 = vtanh.f32 %v1404_v50 }
 0x7b6   :  { %v2055_v55 = vpop.eup %2054 }
 0x7b7   :  { %v1407_v9 = vmul.f32 %v2055_v55, %v1406_v54 }
 0x7b9   :  { %v1409_v18 = vadd.f32 %v1408_v6, %v1407_v9 }
 0x7bb   :  { %v1410_v23 = vpack.c.bf16 %v1409_v18, %v1409_v18 }
 0x7bd   :  { %1412 = vst [vmem:[#allocation12 + $0x18] sm:$0xf] %v1410_v23  ;;  %1452 = vmatmul.mubr.bf16.vlgmr.msra.gmra.mrb[44].mxu0 %v1410_v23  ;;  %1902 = vmatmul.mubr.bf16.vlgmr.msra.gmra.mrb[36].mxu1 %v1410_v23 }
 0x890   :  { %v1453_v11 = vpop.f32.mrb[44].mxu0  ;;  %v1494_v37 = vpop.f32.mrb[36].mxu1 }
 0x891   :  { %v1454_v58 = vadd.f32 %v1453_v11, %v2535_v0  ;;  %v1455_v26 = vpop.f32.mrb[45].mxu0  ;;  %v1903_v27 = vpop.f32.mrb[37].mxu1  ;;  %v1495_v59 = vadd.f32 %v1494_v37, %v2543_v62 }
 0x892   :  { %v1456_v20 = vadd.f32 %v1455_v26, %v2537_v13  ;;  %v1457_v10 = vpop.f32.mrb[46].mxu0  ;;  %v1497_v16 = vpop.f32.mrb[38].mxu1 }
 0x893   :  { %v1500_v57 = vadd.f32 %v1454_v58, %v2875_v2  ;;  %v1458_v60 = vpop.f32.mrb[47].mxu0  ;;  %v1904_v61 = vpop.f32.mrb[39].mxu1 }
 0x894   :  { %v1507_v35 = vadd.f32 %v1456_v20, %v2876_v22 }
 0x895   :  { %v1635_v63 = vmul.f32 -1.442695, %v1500_v57 }
 0x896   :  { %v1636_v17 = vmul.f32 -1.442695, %v1507_v35 }
 0x897   :  { %2056 = vpow2.f32 %v1635_v63 }
 0x898   :  { %2058 = vpow2.f32 %v1636_v17 }
 0x8a1   :  { %v2057_v1 = vpop.eup %2056 }
 0x8a2   :  { %v1504_v24 = vadd.f32 1.0, %v2057_v1  ;;  %v2059_v0 = vpop.eup %2058 }
 0x8a3   :  { %v1511_v5 = vadd.f32 1.0, %v2059_v0 }
 0x8a4   :  { %2060 = vrcp.f32 %v1504_v24 }
 0x8a5   :  { %2062 = vrcp.f32 %v1511_v5 }
 0x8ae   :  { %v2061_v13 = vpop.eup %2060 }
 0x8af   :  { %v1514_v12 = vmul.f32 %v2061_v13, %v1495_v59  ;;  %v2063_v4 = vpop.eup %2062 }
 0x8b0   :  { %v1517_v28 = vsub.f32 1.0, %v2063_v4  ;;  %v1519_v53 = vmul.f32 %v2063_v4, %v1409_v18 }
 0x8b1   :  { %v1515_v21 = vadd.f32 %v1514_v12, %v2877_v15 }
 0x8b3   :  { %2064 = vtanh.f32 %v1515_v21 }
 0x8bd   :  { %v2065_v25 = vpop.eup %2064 }
 0x8be   :  { %v1518_v56 = vmul.f32 %v2065_v25, %v1517_v28 }
 0x8c0   :  { %v1520_v31 = vadd.f32 %v1519_v53, %v1518_v56 }
 0x8c2   :  { %v1521_v19 = vpack.c.bf16 %v1520_v31, %v1520_v31  ;;  %1528 = vst [vmem:[#allocation13] sm:$0xff] %v1520_v31 }
 0x8c3   :  { %2189 = shalt.err (!%p2186_p8)
}
 0x8c4   :  { %s2190_s0 = scalar_lea.hbm %s2851_s7, 128 }
 0x8c5   :  { %p2191_p9 = scmp.ne.s32.totalorder %s2851_s7, %s2190_s0  ;;  %p2194_p10 = scmp.lt.u32.totalorder %s2190_s0, %s2851_s7 }
 0x8c7   :  { %p2196_p11 = pnand %p2194_p10, %p2191_p9 }
 0x8c9   :  { %2199 = shalt.err (!%p2196_p11)
}
 0x8ca   :  { %1550 = dma.vmem_to_hbm [thread:$0]  %s1548_s8, 128, %s2851_s7, [#allocation14]   ;;  %1523 = vst [vmem:[#allocation12 + $0x1c] sm:$0xf] %v1521_v19 }
 0x8cb   :  { %s2200_s19 = scalar_lea.vmem %s2810_s10, 512  ;;  %p2205_p13 = scmp.lt.s32.totalorder %s2810_s10, %s2810_s10 }
 0x8cc   :  { %p2201_p12 = scmp.ne.s32.totalorder %s2810_s10, %s2200_s19  ;;  %p2206_p0 = scmp.lt.s32.totalorder %s2200_s19, %s2200_s19 }
 0x8ce   :  { %p2207_p1 = por %p2206_p0, %p2205_p13 }
 0x8d0   :  { %p2208_p2 = pnand %p2207_p1, %p2201_p12 }
 0x8d2   :  { %2211 = shalt.err (!%p2208_p2)
}
 0x8d3   :  { %s2212_s22 = scalar_lea.hbm %s2850_s6, 512 }
 0x8d4   :  { %p2213_p3 = scmp.ne.s32.totalorder %s2850_s6, %s2212_s22  ;;  %p2216_p4 = scmp.lt.u32.totalorder %s2212_s22, %s2850_s6 }
 0x8d6   :  { %p2218_p5 = pnand %p2216_p4, %p2213_p3 }
 0x8d8   :  { %2221 = shalt.err (!%p2218_p5)
}
 0x8d9   :  { %1540 = dma.vmem_to_hbm [thread:$0]  %s2810_s10, 512, %s2850_s6, [#allocation6], %s2234_s1, %s2234_s1, %s2235_s23  }
 0x8da   :  { %2228 = dma.done.wait [#allocation6], 512  }
 0x8db   :  { %2229 = vsyncadd [#allocation6], 4294966784 }
 0x8dc   :  { %2230 = dma.done.wait [#allocation14], 128  }
 0x8dd   :  { %2231 = vsyncadd [#allocation14], 4294967168 }
 0x8de   :  { %1557 = vsyncpa [#allocation5], 1 }
 0x8df   :  { %1558 = vsyncpa [#allocation8], 1 }
 0x8e0   :  { %1559 = vsyncpa [#allocation11], 1 }
 0x8e1   :  { %1560 = vsyncpa [#allocation6], 1 }
 0x8e2   :  { %1561 = vsyncpa [#allocation14], 1 }

</bundles_post_ra>
